<compile_context>
chip_gen: v7x
topology: tpu7x:2x2x1
jax: 0.10.0
libtpu: 0.0.40
codegen_flags: <defaults>
</compile_context>

<pallas_src>
from functools import partial

import jax
import jax.numpy as jnp
from jax.experimental import pallas as pl
from jax.experimental.pallas import tpu as pltpu


def _largest_divisor_upto(total: int, cap: int) -> int:
    best = 1
    for cand in range(1, min(total, cap) + 1):
        if total % cand == 0:
            best = cand
    return best


def _dymixprop_kernel(gdep: int, alpha: float):
    """Kernel processing a block of S (batch, time) graph slices per grid step."""

    def kernel(x_ref, w1_ref, b1_ref, w2_ref, b2_ref,
               wm1_ref, bm1_ref, wm2_ref, bm2_ref, out_ref):
        f32, bf16 = jnp.float32, jnp.bfloat16
        s, v, c_in = x_ref.shape
        c_out = out_ref.shape[-1]

        x3 = x_ref[...].astype(f32)                    # (S, V, C)  f32
        x2d_b = x3.reshape(s * v, c_in).astype(bf16)   # (S*V, C)   bf16

        # A @ B^T contraction (contract last dims) -- MXU-native, no transpose.
        cT = (((1,), (1,)), ((), ()))

        # lin1 / lin2 (1x1 conv over channels) + tanh, activations in f32.
        b1 = b1_ref[...].astype(f32)                   # (1, C)
        b2 = b2_ref[...].astype(f32)
        x1 = jnp.tanh(jax.lax.dot_general(x2d_b, w1_ref[...], cT,
                                          preferred_element_type=f32) + b1)
        x2 = jnp.tanh(jax.lax.dot_general(x2d_b, w2_ref[...], cT,
                                          preferred_element_type=f32) + b2)
        x1b = x1.reshape(s, v, c_in).astype(bf16)
        x2b = x2.reshape(s, v, c_in).astype(bf16)

        # adj[s,i,j] = sum_c x1[s,i,c] x2[s,j,c]; adj^T directly by swapping
        # the operands of the same A @ B^T pattern (no transpose op).
        adj = jnp.einsum('sic,sjc->sij', x1b, x2b, preferred_element_type=f32)
        adjT = jnp.einsum('sic,sjc->sij', x2b, x1b, preferred_element_type=f32)

        # torch:  adj0 = softmax(adj, dim=2);  adj1 = softmax(adj^T, dim=2)
        # In node-row layout both propagations become plain matmuls with
        # COLUMN-softmaxed matrices:
        #   nconv(h, adj0) == colsoftmax(adj^T) @ h
        #   nconv(h, adj1) == colsoftmax(adj)   @ h
        def colsoftmax(a):                             # softmax over axis 1, f32
            m = jnp.max(a, axis=1, keepdims=True)
            e = jnp.exp(a - m)
            return e / jnp.sum(e, axis=1, keepdims=True)

        m0 = colsoftmax(adjT).astype(bf16)             # plays the role of adj0
        m1 = colsoftmax(adj).astype(bf16)              # plays the role of adj1

        bm1 = bm1_ref[...].astype(f32)                 # (1, c_out)
        bm2 = bm2_ref[...].astype(f32)

        def mixprop(m, wm_ref, bm):
            # h_0 = x; h_k = alpha*x + (1-alpha) * (m @ h_{k-1})
            # mlp(concat_k h_k) == sum_k h_k @ wm[k]^T  (per-hop weight slices)
            h3 = x3
            acc = jax.lax.dot_general(x2d_b, wm_ref[0], cT,
                                      preferred_element_type=f32)
            for k in range(1, gdep + 1):
                prop = jnp.einsum('svw,swc->svc', m, h3.astype(bf16),
                                  preferred_element_type=f32)
                h3 = alpha * x3 + (1.0 - alpha) * prop
                acc = acc + jax.lax.dot_general(
                    h3.reshape(s * v, c_in).astype(bf16), wm_ref[k], cT,
                    preferred_element_type=f32)
            return acc + bm

        out2d = mixprop(m0, wm1_ref, bm1) + mixprop(m1, wm2_ref, bm2)
        out_ref[...] = out2d.reshape(s, v, c_out).astype(out_ref.dtype)

    return kernel


@partial(jax.jit, static_argnames=("gdep", "alpha"))
def dy_mixprop(x, w1, b1, w2, b2, wm1, bm1, wm2, bm2, *, gdep, alpha):
    """DyMixprop forward.

    x   : (N, C_in, V, L)
    w1/w2 : (C_in, C_in), b1/b2 : (C_in,)               -- lin1 / lin2 (1x1 conv)
    wm1/wm2 : (C_out, (gdep+1)*C_in), bm1/bm2 : (C_out,) -- mlp1 / mlp2
    returns (N, C_out, V, L)
    """
    n, c_in, v, l = x.shape
    c_out = wm1.shape[0]
    f32, bf16 = jnp.float32, jnp.bfloat16

    total = n * l
    s_blk = _largest_divisor_upto(total, 8)      # graph slices per grid step

    # (N, C, V, L) -> (N*L, V, C): nodes on sublanes, channels on lanes.
    x_s = jnp.transpose(x, (0, 3, 2, 1)).reshape(total, v, c_in).astype(f32)

    # MLP weights regrouped per hop: (C_out, (gdep+1)*C) -> (gdep+1, C_out, C)
    wm1_h = wm1.reshape(c_out, gdep + 1, c_in).transpose(1, 0, 2)
    wm2_h = wm2.reshape(c_out, gdep + 1, c_in).transpose(1, 0, 2)

    def full(shape):
        return pl.BlockSpec(shape, lambda i: (0,) * len(shape))

    out = pl.pallas_call(
        _dymixprop_kernel(int(gdep), float(alpha)),
        out_shape=jax.ShapeDtypeStruct((total, v, c_out), f32),
        grid=(total // s_blk,),
        in_specs=[
            pl.BlockSpec((s_blk, v, c_in), lambda i: (i, 0, 0)),   # x block
            full((c_in, c_in)), full((1, c_in)),                   # lin1
            full((c_in, c_in)), full((1, c_in)),                   # lin2
            full((gdep + 1, c_out, c_in)), full((1, c_out)),       # mlp1
            full((gdep + 1, c_out, c_in)), full((1, c_out)),       # mlp2
        ],
        out_specs=pl.BlockSpec((s_blk, v, c_out), lambda i: (i, 0, 0)),
        compiler_params=pltpu.CompilerParams(
            dimension_semantics=("parallel",)),
    )(
        x_s,
        w1.astype(bf16), b1.reshape(1, c_in).astype(f32),
        w2.astype(bf16), b2.reshape(1, c_in).astype(f32),
        wm1_h.astype(bf16), bm1.reshape(1, c_out).astype(f32),
        wm2_h.astype(bf16), bm2.reshape(1, c_out).astype(f32),
    )

    # (N*L, V, C_out) -> (N, C_out, V, L)
    return out.reshape(n, l, v, c_out).transpose(0, 3, 2, 1)


def _dy_mixprop_ref(x, w1, b1, w2, b2, wm1, bm1, wm2, bm2, gdep, alpha):
    """Pure-JAX reference mirroring the PyTorch forward literally, with the
    same bf16-operand / f32-accumulation matmul precision as the kernel."""
    f32, bf16 = jnp.float32, jnp.bfloat16

    def conv1x1(t, w, b):                              # t: (N, Cin, V, L)
        y = jnp.einsum('oc,ncvl->novl', w.astype(bf16), t.astype(bf16),
                       preferred_element_type=f32)
        return y + b[None, :, None, None].astype(f32)

    def nconv(t, a):                                   # 'ncvl,nvwl->ncwl'
        return jnp.einsum('ncvl,nvwl->ncwl', t.astype(bf16), a.astype(bf16),
                          preferred_element_type=f32)

    x = x.astype(f32)
    x1 = jnp.tanh(conv1x1(x, w1, b1))
    x2 = jnp.tanh(conv1x1(x, w2, b2))
    adj = nconv(jnp.transpose(x1, (0, 2, 1, 3)), x2)   # (N, V, V, L)
    adj0 = jax.nn.softmax(adj, axis=2)
    adj1 = jax.nn.softmax(jnp.transpose(adj, (0, 2, 1, 3)), axis=2)

    def mixhop(a, wm, bm):
        h = x
        out = [h]
        for _ in range(gdep):
            h = alpha * x + (1.0 - alpha) * nconv(h, a)
            out.append(h)
        ho = jnp.concatenate(out, axis=1)
        return conv1x1(ho, wm, bm)

    return mixhop(adj0, wm1, bm1) + mixhop(adj1, wm2, bm2)


if __name__ == "__main__":
    batch, c_in, c_out, num_nodes, seq_len = 2, 4, 8, 16, 8
    gdep, alpha = 2, 0.05   # self.dropout exists but is unused in forward

    key = jax.random.PRNGKey(0)
    ks = jax.random.split(key, 9)
    scale = 0.3
    x = jax.random.normal(ks[0], (batch, c_in, num_nodes, seq_len), jnp.float32)
    w1 = scale * jax.random.normal(ks[1], (c_in, c_in), jnp.float32)
    b1 = scale * jax.random.normal(ks[2], (c_in,), jnp.float32)
    w2 = scale * jax.random.normal(ks[3], (c_in, c_in), jnp.float32)
    b2 = scale * jax.random.normal(ks[4], (c_in,), jnp.float32)
    wm1 = scale * jax.random.normal(ks[5], (c_out, (gdep + 1) * c_in), jnp.float32)
    bm1 = scale * jax.random.normal(ks[6], (c_out,), jnp.float32)
    wm2 = scale * jax.random.normal(ks[7], (c_out, (gdep + 1) * c_in), jnp.float32)
    bm2 = scale * jax.random.normal(ks[8], (c_out,), jnp.float32)

    out = dy_mixprop(x, w1, b1, w2, b2, wm1, bm1, wm2, bm2,
                     gdep=gdep, alpha=alpha)
    out = jax.block_until_ready(out)

    assert out.shape == (batch, c_out, num_nodes, seq_len)
    assert bool(jnp.all(jnp.isfinite(out)))

    ref = _dy_mixprop_ref(x, w1, b1, w2, b2, wm1, bm1, wm2, bm2, gdep, alpha)
    max_err = float(jnp.max(jnp.abs(out - ref)))
    assert max_err < 1e-2, f"max abs err vs reference: {max_err}"

    print("KERNEL_OK")
</pallas_src>

<mosaic_0001>
module attributes {stable_mosaic.version = 11 : i64} {
  func.func @kernel(%arg0: i32, %arg1: memref<8x16x4xf32, #tpu.memory_space<vmem>>, %arg2: memref<4x4xbf16, #tpu.memory_space<vmem>>, %arg3: memref<1x4xf32, #tpu.memory_space<vmem>>, %arg4: memref<4x4xbf16, #tpu.memory_space<vmem>>, %arg5: memref<1x4xf32, #tpu.memory_space<vmem>>, %arg6: memref<3x8x4xbf16, #tpu.memory_space<vmem>>, %arg7: memref<1x8xf32, #tpu.memory_space<vmem>>, %arg8: memref<3x8x4xbf16, #tpu.memory_space<vmem>>, %arg9: memref<1x8xf32, #tpu.memory_space<vmem>>, %arg10: memref<8x16x8xf32, #tpu.memory_space<vmem>>) attributes {dimension_semantics = [#tpu.dimension_semantics<parallel>], iteration_bounds = array<i64: 2>, scalar_prefetch = 0 : i64, scratch_operands = 0 : i64, tpu.core_type = #tpu.core_type<tc>, window_params = [{transform_indices = @transform_0, window_bounds = array<i64: 8, 16, 4>}, {pipeline_mode = #tpu.pipeline_mode<synchronous>, transform_indices = @transform_1, window_bounds = array<i64: 4, 4>}, {pipeline_mode = #tpu.pipeline_mode<synchronous>, transform_indices = @transform_2, window_bounds = array<i64: 1, 4>}, {pipeline_mode = #tpu.pipeline_mode<synchronous>, transform_indices = @transform_3, window_bounds = array<i64: 4, 4>}, {pipeline_mode = #tpu.pipeline_mode<synchronous>, transform_indices = @transform_4, window_bounds = array<i64: 1, 4>}, {pipeline_mode = #tpu.pipeline_mode<synchronous>, transform_indices = @transform_5, window_bounds = array<i64: 3, 8, 4>}, {pipeline_mode = #tpu.pipeline_mode<synchronous>, transform_indices = @transform_6, window_bounds = array<i64: 1, 8>}, {pipeline_mode = #tpu.pipeline_mode<synchronous>, transform_indices = @transform_7, window_bounds = array<i64: 3, 8, 4>}, {pipeline_mode = #tpu.pipeline_mode<synchronous>, transform_indices = @transform_8, window_bounds = array<i64: 1, 8>}, {transform_indices = @transform_9, window_bounds = array<i64: 8, 16, 8>}]} {
    %c0 = arith.constant 0 : index
    %c0_0 = arith.constant 0 : index
    %c0_1 = arith.constant 0 : index
    %0 = vector.load %arg1[%c0, %c0_0, %c0_1] : memref<8x16x4xf32, #tpu.memory_space<vmem>>, vector<8x16x4xf32>
    %1 = vector.shape_cast %0 : vector<8x16x4xf32> to vector<128x4xf32>
    %2 = arith.truncf %1 : vector<128x4xf32> to vector<128x4xbf16>
    %c0_2 = arith.constant 0 : index
    %c0_3 = arith.constant 0 : index
    %3 = vector.load %arg3[%c0_2, %c0_3] : memref<1x4xf32, #tpu.memory_space<vmem>>, vector<1x4xf32>
    %c0_4 = arith.constant 0 : index
    %c0_5 = arith.constant 0 : index
    %4 = vector.load %arg5[%c0_4, %c0_5] : memref<1x4xf32, #tpu.memory_space<vmem>>, vector<1x4xf32>
    %c0_6 = arith.constant 0 : index
    %c0_7 = arith.constant 0 : index
    %5 = vector.load %arg2[%c0_6, %c0_7] : memref<4x4xbf16, #tpu.memory_space<vmem>>, vector<4x4xbf16>
    %cst = arith.constant dense<0.000000e+00> : vector<128x4xf32>
    %6 = tpu.matmul %2, %5, %cst {dimension_numbers = #tpu.dot_dimension_numbers<[1], [1], [0], [0], [0, 0, 1, 0], [], []>} : vector<128x4xbf16>, vector<4x4xbf16>, vector<128x4xf32> -> vector<128x4xf32>
    %7 = vector.broadcast %3 : vector<1x4xf32> to vector<128x4xf32>
    %8 = arith.addf %6, %7 : vector<128x4xf32>
    %9 = math.tanh %8 : vector<128x4xf32>
    %c0_8 = arith.constant 0 : index
    %c0_9 = arith.constant 0 : index
    %10 = vector.load %arg4[%c0_8, %c0_9] : memref<4x4xbf16, #tpu.memory_space<vmem>>, vector<4x4xbf16>
    %cst_10 = arith.constant dense<0.000000e+00> : vector<128x4xf32>
    %11 = tpu.matmul %2, %10, %cst_10 {dimension_numbers = #tpu.dot_dimension_numbers<[1], [1], [0], [0], [0, 0, 1, 0], [], []>} : vector<128x4xbf16>, vector<4x4xbf16>, vector<128x4xf32> -> vector<128x4xf32>
    %12 = vector.broadcast %4 : vector<1x4xf32> to vector<128x4xf32>
    %13 = arith.addf %11, %12 : vector<128x4xf32>
    %14 = math.tanh %13 : vector<128x4xf32>
    %15 = vector.shape_cast %9 : vector<128x4xf32> to vector<8x16x4xf32>
    %16 = arith.truncf %15 : vector<8x16x4xf32> to vector<8x16x4xbf16>
    %17 = vector.shape_cast %14 : vector<128x4xf32> to vector<8x16x4xf32>
    %18 = arith.truncf %17 : vector<8x16x4xf32> to vector<8x16x4xbf16>
    "tpu.trace_start"() <{level = 10 : i32, message = "sic,sjc->sij"}> : () -> ()
    %cst_11 = arith.constant dense<0.000000e+00> : vector<8x16x16xf32>
    %19 = tpu.matmul %16, %18, %cst_11 {dimension_numbers = #tpu.dot_dimension_numbers<[2], [2], [1], [1], [0, 0, 0, 1, 1, 1], [0], [0]>} : vector<8x16x4xbf16>, vector<8x16x4xbf16>, vector<8x16x16xf32> -> vector<8x16x16xf32>
    %cst_12 = arith.constant dense<0.000000e+00> : vector<8x16x16xf32>
    %20 = tpu.matmul %18, %16, %cst_12 {dimension_numbers = #tpu.dot_dimension_numbers<[2], [2], [1], [1], [0, 0, 0, 1, 1, 1], [0], [0]>} : vector<8x16x4xbf16>, vector<8x16x4xbf16>, vector<8x16x16xf32> -> vector<8x16x16xf32>
    "tpu.trace_stop"() : () -> ()
    %cst_13 = arith.constant dense<0xFF800000> : vector<8x16xf32>
    %21 = vector.multi_reduction <maximumf>, %20, %cst_13 [1] : vector<8x16x16xf32> to vector<8x16xf32>
    %22 = vector.shape_cast %21 : vector<8x16xf32> to vector<8x1x16xf32>
    %23 = vector.broadcast %22 : vector<8x1x16xf32> to vector<8x16x16xf32>
    %24 = arith.subf %20, %23 : vector<8x16x16xf32>
    %25 = math.exp %24 : vector<8x16x16xf32>
    %cst_14 = arith.constant dense<0.000000e+00> : vector<8x16xf32>
    %26 = vector.multi_reduction <add>, %25, %cst_14 [1] : vector<8x16x16xf32> to vector<8x16xf32>
    %27 = vector.shape_cast %26 : vector<8x16xf32> to vector<8x1x16xf32>
    %28 = vector.broadcast %27 : vector<8x1x16xf32> to vector<8x16x16xf32>
    %29 = arith.divf %25, %28 : vector<8x16x16xf32>
    %30 = arith.truncf %29 : vector<8x16x16xf32> to vector<8x16x16xbf16>
    %cst_15 = arith.constant dense<0xFF800000> : vector<8x16xf32>
    %31 = vector.multi_reduction <maximumf>, %19, %cst_15 [1] : vector<8x16x16xf32> to vector<8x16xf32>
    %32 = vector.shape_cast %31 : vector<8x16xf32> to vector<8x1x16xf32>
    %33 = vector.broadcast %32 : vector<8x1x16xf32> to vector<8x16x16xf32>
    %34 = arith.subf %19, %33 : vector<8x16x16xf32>
    %35 = math.exp %34 : vector<8x16x16xf32>
    %cst_16 = arith.constant dense<0.000000e+00> : vector<8x16xf32>
    %36 = vector.multi_reduction <add>, %35, %cst_16 [1] : vector<8x16x16xf32> to vector<8x16xf32>
    %37 = vector.shape_cast %36 : vector<8x16xf32> to vector<8x1x16xf32>
    %38 = vector.broadcast %37 : vector<8x1x16xf32> to vector<8x16x16xf32>
    %39 = arith.divf %35, %38 : vector<8x16x16xf32>
    %40 = arith.truncf %39 : vector<8x16x16xf32> to vector<8x16x16xbf16>
    %c0_17 = arith.constant 0 : index
    %c0_18 = arith.constant 0 : index
    %41 = vector.load %arg7[%c0_17, %c0_18] : memref<1x8xf32, #tpu.memory_space<vmem>>, vector<1x8xf32>
    %c0_19 = arith.constant 0 : index
    %c0_20 = arith.constant 0 : index
    %42 = vector.load %arg9[%c0_19, %c0_20] : memref<1x8xf32, #tpu.memory_space<vmem>>, vector<1x8xf32>
    %c0_21 = arith.constant 0 : index
    %c0_22 = arith.constant 0 : index
    %c0_23 = arith.constant 0 : index
    %43 = vector.load %arg6[%c0_21, %c0_22, %c0_23] : memref<3x8x4xbf16, #tpu.memory_space<vmem>>, vector<1x8x4xbf16>
    %44 = vector.shape_cast %43 : vector<1x8x4xbf16> to vector<8x4xbf16>
    %cst_24 = arith.constant dense<0.000000e+00> : vector<128x8xf32>
    %45 = tpu.matmul %2, %44, %cst_24 {dimension_numbers = #tpu.dot_dimension_numbers<[1], [1], [0], [0], [0, 0, 1, 0], [], []>} : vector<128x4xbf16>, vector<8x4xbf16>, vector<128x8xf32> -> vector<128x8xf32>
    %46 = arith.truncf %0 : vector<8x16x4xf32> to vector<8x16x4xbf16>
    "tpu.trace_start"() <{level = 10 : i32, message = "svw,swc->svc"}> : () -> ()
    %cst_25 = arith.constant dense<0.000000e+00> : vector<8x16x4xf32>
    %47 = tpu.matmul %30, %46, %cst_25 {dimension_numbers = #tpu.dot_dimension_numbers<[2], [1], [1], [2], [0, 0, 0, 1, 1, 2], [0], [0]>} : vector<8x16x16xbf16>, vector<8x16x4xbf16>, vector<8x16x4xf32> -> vector<8x16x4xf32>
    "tpu.trace_stop"() : () -> ()
    %cst_26 = arith.constant 5.000000e-02 : f32
    %48 = vector.broadcast %cst_26 : f32 to vector<8x16x4xf32>
    %49 = arith.mulf %48, %0 : vector<8x16x4xf32>
    %cst_27 = arith.constant 0.949999988 : f32
    %50 = vector.broadcast %cst_27 : f32 to vector<8x16x4xf32>
    %51 = arith.mulf %50, %47 : vector<8x16x4xf32>
    %52 = arith.addf %49, %51 : vector<8x16x4xf32>
    %53 = vector.shape_cast %52 : vector<8x16x4xf32> to vector<128x4xf32>
    %54 = arith.truncf %53 : vector<128x4xf32> to vector<128x4xbf16>
    %c1 = arith.constant 1 : index
    %c0_28 = arith.constant 0 : index
    %c0_29 = arith.constant 0 : index
    %55 = vector.load %arg6[%c1, %c0_28, %c0_29] : memref<3x8x4xbf16, #tpu.memory_space<vmem>>, vector<1x8x4xbf16>
    %56 = vector.shape_cast %55 : vector<1x8x4xbf16> to vector<8x4xbf16>
    %cst_30 = arith.constant dense<0.000000e+00> : vector<128x8xf32>
    %57 = tpu.matmul %54, %56, %cst_30 {dimension_numbers = #tpu.dot_dimension_numbers<[1], [1], [0], [0], [0, 0, 1, 0], [], []>} : vector<128x4xbf16>, vector<8x4xbf16>, vector<128x8xf32> -> vector<128x8xf32>
    %58 = arith.addf %45, %57 : vector<128x8xf32>
    %59 = arith.truncf %52 : vector<8x16x4xf32> to vector<8x16x4xbf16>
    "tpu.trace_start"() <{level = 10 : i32, message = "svw,swc->svc"}> : () -> ()
    %cst_31 = arith.constant dense<0.000000e+00> : vector<8x16x4xf32>
    %60 = tpu.matmul %30, %59, %cst_31 {dimension_numbers = #tpu.dot_dimension_numbers<[2], [1], [1], [2], [0, 0, 0, 1, 1, 2], [0], [0]>} : vector<8x16x16xbf16>, vector<8x16x4xbf16>, vector<8x16x4xf32> -> vector<8x16x4xf32>
    "tpu.trace_stop"() : () -> ()
    %cst_32 = arith.constant 5.000000e-02 : f32
    %61 = vector.broadcast %cst_32 : f32 to vector<8x16x4xf32>
    %62 = arith.mulf %61, %0 : vector<8x16x4xf32>
    %cst_33 = arith.constant 0.949999988 : f32
    %63 = vector.broadcast %cst_33 : f32 to vector<8x16x4xf32>
    %64 = arith.mulf %63, %60 : vector<8x16x4xf32>
    %65 = arith.addf %62, %64 : vector<8x16x4xf32>
    %66 = vector.shape_cast %65 : vector<8x16x4xf32> to vector<128x4xf32>
    %67 = arith.truncf %66 : vector<128x4xf32> to vector<128x4xbf16>
    %c2 = arith.constant 2 : index
    %c0_34 = arith.constant 0 : index
    %c0_35 = arith.constant 0 : index
    %68 = vector.load %arg6[%c2, %c0_34, %c0_35] : memref<3x8x4xbf16, #tpu.memory_space<vmem>>, vector<1x8x4xbf16>
    %69 = vector.shape_cast %68 : vector<1x8x4xbf16> to vector<8x4xbf16>
    %cst_36 = arith.constant dense<0.000000e+00> : vector<128x8xf32>
    %70 = tpu.matmul %67, %69, %cst_36 {dimension_numbers = #tpu.dot_dimension_numbers<[1], [1], [0], [0], [0, 0, 1, 0], [], []>} : vector<128x4xbf16>, vector<8x4xbf16>, vector<128x8xf32> -> vector<128x8xf32>
    %71 = arith.addf %58, %70 : vector<128x8xf32>
    %72 = vector.broadcast %41 : vector<1x8xf32> to vector<128x8xf32>
    %73 = arith.addf %71, %72 : vector<128x8xf32>
    %c0_37 = arith.constant 0 : index
    %c0_38 = arith.constant 0 : index
    %c0_39 = arith.constant 0 : index
    %74 = vector.load %arg8[%c0_37, %c0_38, %c0_39] : memref<3x8x4xbf16, #tpu.memory_space<vmem>>, vector<1x8x4xbf16>
    %75 = vector.shape_cast %74 : vector<1x8x4xbf16> to vector<8x4xbf16>
    %cst_40 = arith.constant dense<0.000000e+00> : vector<128x8xf32>
    %76 = tpu.matmul %2, %75, %cst_40 {dimension_numbers = #tpu.dot_dimension_numbers<[1], [1], [0], [0], [0, 0, 1, 0], [], []>} : vector<128x4xbf16>, vector<8x4xbf16>, vector<128x8xf32> -> vector<128x8xf32>
    %77 = arith.truncf %0 : vector<8x16x4xf32> to vector<8x16x4xbf16>
    "tpu.trace_start"() <{level = 10 : i32, message = "svw,swc->svc"}> : () -> ()
    %cst_41 = arith.constant dense<0.000000e+00> : vector<8x16x4xf32>
    %78 = tpu.matmul %40, %77, %cst_41 {dimension_numbers = #tpu.dot_dimension_numbers<[2], [1], [1], [2], [0, 0, 0, 1, 1, 2], [0], [0]>} : vector<8x16x16xbf16>, vector<8x16x4xbf16>, vector<8x16x4xf32> -> vector<8x16x4xf32>
    "tpu.trace_stop"() : () -> ()
    %cst_42 = arith.constant 5.000000e-02 : f32
    %79 = vector.broadcast %cst_42 : f32 to vector<8x16x4xf32>
    %80 = arith.mulf %79, %0 : vector<8x16x4xf32>
    %cst_43 = arith.constant 0.949999988 : f32
    %81 = vector.broadcast %cst_43 : f32 to vector<8x16x4xf32>
    %82 = arith.mulf %81, %78 : vector<8x16x4xf32>
    %83 = arith.addf %80, %82 : vector<8x16x4xf32>
    %84 = vector.shape_cast %83 : vector<8x16x4xf32> to vector<128x4xf32>
    %85 = arith.truncf %84 : vector<128x4xf32> to vector<128x4xbf16>
    %c1_44 = arith.constant 1 : index
    %c0_45 = arith.constant 0 : index
    %c0_46 = arith.constant 0 : index
    %86 = vector.load %arg8[%c1_44, %c0_45, %c0_46] : memref<3x8x4xbf16, #tpu.memory_space<vmem>>, vector<1x8x4xbf16>
    %87 = vector.shape_cast %86 : vector<1x8x4xbf16> to vector<8x4xbf16>
    %cst_47 = arith.constant dense<0.000000e+00> : vector<128x8xf32>
    %88 = tpu.matmul %85, %87, %cst_47 {dimension_numbers = #tpu.dot_dimension_numbers<[1], [1], [0], [0], [0, 0, 1, 0], [], []>} : vector<128x4xbf16>, vector<8x4xbf16>, vector<128x8xf32> -> vector<128x8xf32>
    %89 = arith.addf %76, %88 : vector<128x8xf32>
    %90 = arith.truncf %83 : vector<8x16x4xf32> to vector<8x16x4xbf16>
    "tpu.trace_start"() <{level = 10 : i32, message = "svw,swc->svc"}> : () -> ()
    %cst_48 = arith.constant dense<0.000000e+00> : vector<8x16x4xf32>
    %91 = tpu.matmul %40, %90, %cst_48 {dimension_numbers = #tpu.dot_dimension_numbers<[2], [1], [1], [2], [0, 0, 0, 1, 1, 2], [0], [0]>} : vector<8x16x16xbf16>, vector<8x16x4xbf16>, vector<8x16x4xf32> -> vector<8x16x4xf32>
    "tpu.trace_stop"() : () -> ()
    %cst_49 = arith.constant 5.000000e-02 : f32
    %92 = vector.broadcast %cst_49 : f32 to vector<8x16x4xf32>
    %93 = arith.mulf %92, %0 : vector<8x16x4xf32>
    %cst_50 = arith.constant 0.949999988 : f32
    %94 = vector.broadcast %cst_50 : f32 to vector<8x16x4xf32>
    %95 = arith.mulf %94, %91 : vector<8x16x4xf32>
    %96 = arith.addf %93, %95 : vector<8x16x4xf32>
    %97 = vector.shape_cast %96 : vector<8x16x4xf32> to vector<128x4xf32>
    %98 = arith.truncf %97 : vector<128x4xf32> to vector<128x4xbf16>
    %c2_51 = arith.constant 2 : index
    %c0_52 = arith.constant 0 : index
    %c0_53 = arith.constant 0 : index
    %99 = vector.load %arg8[%c2_51, %c0_52, %c0_53] : memref<3x8x4xbf16, #tpu.memory_space<vmem>>, vector<1x8x4xbf16>
    %100 = vector.shape_cast %99 : vector<1x8x4xbf16> to vector<8x4xbf16>
    %cst_54 = arith.constant dense<0.000000e+00> : vector<128x8xf32>
    %101 = tpu.matmul %98, %100, %cst_54 {dimension_numbers = #tpu.dot_dimension_numbers<[1], [1], [0], [0], [0, 0, 1, 0], [], []>} : vector<128x4xbf16>, vector<8x4xbf16>, vector<128x8xf32> -> vector<128x8xf32>
    %102 = arith.addf %89, %101 : vector<128x8xf32>
    %103 = vector.broadcast %42 : vector<1x8xf32> to vector<128x8xf32>
    %104 = arith.addf %102, %103 : vector<128x8xf32>
    %105 = arith.addf %73, %104 : vector<128x8xf32>
    %106 = vector.shape_cast %105 : vector<128x8xf32> to vector<8x16x8xf32>
    %c0_55 = arith.constant 0 : index
    %c0_56 = arith.constant 0 : index
    %c0_57 = arith.constant 0 : index
    %107 = vector.load %arg10[%c0_55, %c0_56, %c0_57] : memref<8x16x8xf32, #tpu.memory_space<vmem>>, vector<8x16x8xf32>
    tpu.vector_store %arg10[%c0_55, %c0_56, %c0_57], %106 {strides = array<i32>} : memref<8x16x8xf32, #tpu.memory_space<vmem>>, vector<8x16x8xf32>,
    return
  }
  func.func @transform_0(%arg0: i32) -> (i32, i32, i32) {
    %c0_i32 = arith.constant 0 : i32
    %c0_i32_0 = arith.constant 0 : i32
    %c0_i32_1 = arith.constant 0 : i32
    return %arg0, %c0_i32, %c0_i32_0 : i32, i32, i32
  }
  func.func @transform_1(%arg0: i32) -> (i32, i32) {
    %c0_i32 = arith.constant 0 : i32
    %c0_i32_0 = arith.constant 0 : i32
    %c0_i32_1 = arith.constant 0 : i32
    return %c0_i32, %c0_i32_0 : i32, i32
  }
  func.func @transform_2(%arg0: i32) -> (i32, i32) {
    %c0_i32 = arith.constant 0 : i32
    %c0_i32_0 = arith.constant 0 : i32
    %c0_i32_1 = arith.constant 0 : i32
    return %c0_i32, %c0_i32_0 : i32, i32
  }
  func.func @transform_3(%arg0: i32) -> (i32, i32) {
    %c0_i32 = arith.constant 0 : i32
    %c0_i32_0 = arith.constant 0 : i32
    %c0_i32_1 = arith.constant 0 : i32
    return %c0_i32, %c0_i32_0 : i32, i32
  }
  func.func @transform_4(%arg0: i32) -> (i32, i32) {
    %c0_i32 = arith.constant 0 : i32
    %c0_i32_0 = arith.constant 0 : i32
    %c0_i32_1 = arith.constant 0 : i32
    return %c0_i32, %c0_i32_0 : i32, i32
  }
  func.func @transform_5(%arg0: i32) -> (i32, i32, i32) {
    %c0_i32 = arith.constant 0 : i32
    %c0_i32_0 = arith.constant 0 : i32
    %c0_i32_1 = arith.constant 0 : i32
    %c0_i32_2 = arith.constant 0 : i32
    return %c0_i32, %c0_i32_0, %c0_i32_1 : i32, i32, i32
  }
  func.func @transform_6(%arg0: i32) -> (i32, i32) {
    %c0_i32 = arith.constant 0 : i32
    %c0_i32_0 = arith.constant 0 : i32
    %c0_i32_1 = arith.constant 0 : i32
    return %c0_i32, %c0_i32_0 : i32, i32
  }
  func.func @transform_7(%arg0: i32) -> (i32, i32, i32) {
    %c0_i32 = arith.constant 0 : i32
    %c0_i32_0 = arith.constant 0 : i32
    %c0_i32_1 = arith.constant 0 : i32
    %c0_i32_2 = arith.constant 0 : i32
    return %c0_i32, %c0_i32_0, %c0_i32_1 : i32, i32, i32
  }
  func.func @transform_8(%arg0: i32) -> (i32, i32) {
    %c0_i32 = arith.constant 0 : i32
    %c0_i32_0 = arith.constant 0 : i32
    %c0_i32_1 = arith.constant 0 : i32
    return %c0_i32, %c0_i32_0 : i32, i32
  }
  func.func @transform_9(%arg0: i32) -> (i32, i32, i32) {
    %c0_i32 = arith.constant 0 : i32
    %c0_i32_0 = arith.constant 0 : i32
    %c0_i32_1 = arith.constant 0 : i32
    return %arg0, %c0_i32, %c0_i32_0 : i32, i32, i32
  }
}

</mosaic_0001>

<bundles_post_ra>
// kernel: dy_mixprop.1
= control target key start
LH: loop header
LB: loop body
LE: loop exit
PB: predicated region body
PF: predicated region fallthrough
CT: control target
= control target key end

     0   :  { %s5323_s30 = smov 0   ;;  %s6403_s0 = inlined_call_operand.vmem [shape: f32[16,16,4], index: 0, kind: input, shape index: {}]   ;;  %s6404_s1 = inlined_call_operand.vmem [shape: bf16[4,4], index: 1, kind: input, shape index: {}]   ;;  %s6405_s2 = inlined_call_operand.vmem [shape: f32[1,4], index: 2, kind: input, shape index: {}]   ;;  %s6406_s3 = inlined_call_operand.vmem [shape: bf16[4,4], index: 3, kind: input, shape index: {}]   ;;  %s6407_s4 = inlined_call_operand.vmem [shape: f32[1,4], index: 4, kind: input, shape index: {}]   ;;  %s6408_s5 = inlined_call_operand.vmem [shape: bf16[3,8,4], index: 5, kind: input, shape index: {}]   ;;  %s6409_s6 = inlined_call_operand.vmem [shape: f32[1,8], index: 6, kind: input, shape index: {}]   ;;  %s6410_s7 = inlined_call_operand.vmem [shape: bf16[3,8,4], index: 7, kind: input, shape index: {}]   ;;  %s6411_s8 = inlined_call_operand.vmem [shape: f32[1,8], index: 8, kind: input, shape index: {}]   ;;  %s6412_s9 = inlined_call_operand.vmem [shape: f32[16,16,8], index: 9, kind: output, shape index: {}]  }
   0x1 LB: > { %s4219_s10 = sadd.s32 4294967295, %s5269_s30   ;;  %p4223_p0 = scmp.ge.s32.totalorder %s5269_s30, 1  ;;  %s5269_s30 = sphi %s5323_s30, %s19_s30  }
   0x2   : > { %p289_p1 = scmp.lt.s32.totalorder %s5269_s30, 3 }
   0x4   : > { %p290_p2 = pnand %p4223_p0, %p289_p1 }
   0x6   : > { %293 = sbr.rel (%p290_p2) target bundleno = 1798 (0x706), region = 56 }
   0xd   : > { %v368_v0 = vld [vmem:[%s6404_s1] sm:$0x3]  ;;  %vm375_vm0 = vcmask 31744   ;;  %s4224_s13 = sshll.u32 %s4219_s10, 3  ;;  %v6413_v28 = vmov 0.0   ;;  %vm5272_vm1 = vmmov 0  }
   0xe   : > { %v516_v1 = vld [vmem:[%s6406_s3] sm:$0x3]  ;;  %5069 = vmatprep.subr.msk.bf16.mxu1 %vm375_vm0, %v368_v0  ;;  %v401_v2 = vsel %vm375_vm0, %v368_v0, 0  ;;  %p328_p3 = scmp.lt.s32.totalorder %s4224_s13, 15  ;;  %5068 = vmatprep.subr.msk.bf16.mxu0 %vm375_vm0, %v368_v0  ;;  %vm1359_vm2 = vcmask 130048   ;;  %vm4144_vm3 = vcmask 64512  }
   0xf   : > { %4955 = vmatpush3.bf16.xpose.msra.mxu1 %v401_v2  ;;  %4523 = vmatpush3.bf16.xpose.msra.mxu0 %v401_v2  ;;  %v524_v12 = vsel %vm375_vm0, %v516_v1, 0  ;;  %v4230_v29 = vld [vmem:[%s6405_s2] ss:$0 sm:$0xff] }
  0x10   : > { %s6433_s13 = smov (!%p328_p3, %s4224_s13), 15  ;;  %5070 = vmatprep.subr.msk.bf16.mxu1 %vm375_vm0, %v516_v1  ;;  %4558 = vmatprep.subr.bf16.mxu0 %v6413_v28  ;;  %v5428_v61 = vld [vmem:[%s6407_s4] ss:$0 sm:$0xff] }
  0x11   : > { %s4352_s16 = sshll.u32 %s6433_s13, 4 }
  0x12   : > { %s5349_s19 = scalar_lea.vmem %s6403_s0, %s4352_s16  ;;  %s6366_s24 = scalar_lea.vmem %s6412_s9, %s4352_s16 }
  0x13   : > { %v350_v3 = vld [vmem:[%s5349_s19 + $0x40] sm:$0xff]  ;;  %v351_v4 = vld [vmem:[%s5349_s19 + $0x48] sm:$0xff]  ;;  %v352_v5 = vld [vmem:[%s5349_s19 + $0x50] sm:$0xff] }
  0x14   : > { %v5354_v6 = vpack.c.bf16 %v351_v4, %v350_v3  ;;  %v353_v7 = vld [vmem:[%s5349_s19 + $0x58] sm:$0xff]  ;;  %v354_v8 = vld [vmem:[%s5349_s19 + $0x60] sm:$0xff]  ;;  %v355_v9 = vld [vmem:[%s5349_s19 + $0x68] sm:$0xff] }
  0x15   : > { %v5359_v10 = vpack.c.bf16 %v353_v7, %v352_v5  ;;  %v5361_v11 = vpack.c.bf16 %v355_v9, %v354_v8  ;;  %v342_v13 = vld [vmem:[%s5349_s19] sm:$0xff]  ;;  %v343_v14 = vld [vmem:[%s5349_s19 + $0x8] sm:$0xff]  ;;  %v344_v15 = vld [vmem:[%s5349_s19 + $0x10] sm:$0xff] }
  0x16   : > { %4532 = vmatprep.mubr.msk.bf16.mxu1 %vm375_vm0, %v5354_v6  ;;  %v345_v16 = vld [vmem:[%s5349_s19 + $0x18] sm:$0xff]  ;;  %v5372_v17 = vpack.c.bf16 %v343_v14, %v342_v13  ;;  %v346_v18 = vld [vmem:[%s5349_s19 + $0x20] sm:$0xff]  ;;  %v347_v19 = vld [vmem:[%s5349_s19 + $0x28] sm:$0xff] }
  0x17   : > { %6423 = vst [vmem:[#allocation2_spill] sm:$0xff] %v5361_v11  ;;  %4533 = vmatmul.mubr.msk.bf16.vlgmr.msra.gmra.mrb[0].mxu1 %vm375_vm0, %v5359_v10  ;;  %v356_v20 = vld [vmem:[%s5349_s19 + $0x70] sm:$0xff]  ;;  %v357_v21 = vld [vmem:[%s5349_s19 + $0x78] sm:$0xff]  ;;  %v5380_v22 = vpack.c.bf16 %v345_v16, %v344_v15  ;;  %v5384_v23 = vpack.c.bf16 %v347_v19, %v346_v18 }
  0x18   : > { %6424 = vst [vmem:[#allocation3_spill] sm:$0xff] %v5372_v17  ;;  %4536 = vmatprep.mubr.msk.bf16.mxu1 %vm375_vm0, %v5361_v11  ;;  %4541 = vmatpush3.bf16.xpose.msra.mxu1 %v524_v12  ;;  %v5388_v24 = vpack.c.bf16 %v357_v21, %v356_v20  ;;  %v348_v25 = vld [vmem:[%s5349_s19 + $0x30] sm:$0xff]  ;;  %v349_v26 = vld [vmem:[%s5349_s19 + $0x38] sm:$0xff] }
  0x19   : > { %6425 = vst [vmem:[#allocation4_spill] sm:$0xff] %v5380_v22  ;;  %4524 = vmatprep.mubr.msk.bf16.mxu0 %vm375_vm0, %v5372_v17  ;;  %v5398_v27 = vpack.c.bf16 %v349_v26, %v348_v25  ;;  %4564 = vmatprep.subr.bf16.mxu1 %v6413_v28 }
  0x1a   : > { %4525 = vmatmul.mubr.msk.bf16.vlgmr.msra.gmra.mrb[0].mxu0 %vm375_vm0, %v5380_v22  ;;  %6426 = vst [vmem:[#allocation5_spill] sm:$0xff] %v5388_v24 }
  0x1b   : > { %4528 = vmatprep.mubr.msk.bf16.mxu0 %vm375_vm0, %v5384_v23 }
  0x1f   : > { %4537 = vmatmul.mubr.msk.bf16.gmra.mrb[4].mxu1 %vm375_vm0, %v5388_v24 }
  0x20   : > { %4542 = vmatprep.mubr.msk.bf16.mxu1 %vm375_vm0, %v5372_v17 }
  0x22   : > { %4529 = vmatmul.mubr.msk.bf16.gmra.mrb[4].mxu0 %vm375_vm0, %v5398_v27 }
  0x23   : > { %4560 = vmatprep.mubr.msk.bf16.mxu0 %vm5272_vm1, %v6413_v28 }
  0x27   : > { %4543 = vmatmul.mubr.msk.bf16.vlgmr.msra.gmra.mrb[8].mxu1 %vm375_vm0, %v5380_v22 }
  0x28   : > { %4546 = vmatprep.mubr.msk.bf16.mxu1 %vm375_vm0, %v5384_v23 }
  0x2f   : > { %4547 = vmatmul.mubr.msk.bf16.gmra.mrb[12].mxu1 %vm375_vm0, %v5398_v27 }
  0x30   : > { %4550 = vmatprep.mubr.msk.bf16.mxu1 %vm375_vm0, %v5354_v6 }
  0x37   : > { %4551 = vmatmul.mubr.msk.bf16.gmra.mrb[16].mxu1 %vm375_vm0, %v5359_v10 }
  0x38   : > { %4554 = vmatprep.mubr.msk.bf16.mxu1 %vm375_vm0, %v5361_v11 }
  0x3f   : > { %4555 = vmatmul.mubr.msk.bf16.gmra.mrb[20].mxu1 %vm375_vm0, %v5388_v24 }
  0x40   : > { %4566 = vmatprep.mubr.msk.bf16.mxu1 %vm5272_vm1, %v6413_v28 }
  0xea   : > { %v4534_v30 = vpop.f32.mrb[0].mxu1 }
  0xeb   : > { %v478_v31 = vadd.f32 %v4534_v30, %v4230_v29  ;;  %v469_v32 = vpop.f32.mrb[1].mxu1 }
  0xec   : > { %v470_v33 = vadd.f32 %v4230_v29, %v469_v32  ;;  %v4535_v34 = vpop.f32.mrb[2].mxu1 }
  0xed   : > { %5087 = vtanh.f32 %v478_v31  ;;  %v481_v35 = vadd.f32 %v4535_v34, %v4230_v29  ;;  %v472_v36 = vpop.f32.mrb[3].mxu1  ;;  %v4526_v37 = vpop.f32.mrb[0].mxu0 }
  0xee   : > { %5089 = vtanh.f32 %v470_v33  ;;  %v473_v38 = vadd.f32 %v4230_v29, %v472_v36  ;;  %v446_v39 = vadd.f32 %v4526_v37, %v4230_v29  ;;  %v437_v40 = vpop.f32.mrb[1].mxu0 }
  0xef   : > { %5091 = vtanh.f32 %v481_v35  ;;  %v438_v41 = vadd.f32 %v4230_v29, %v437_v40  ;;  %v4527_v42 = vpop.f32.mrb[2].mxu0 }
  0xf0   : > { %5093 = vtanh.f32 %v473_v38  ;;  %v449_v43 = vadd.f32 %v4527_v42, %v4230_v29  ;;  %v440_v44 = vpop.f32.mrb[3].mxu0 }
  0xf1   : > { %5095 = vtanh.f32 %v446_v39  ;;  %v441_v45 = vadd.f32 %v4230_v29, %v440_v44 }
  0xf2   : > { %v4538_v46 = vpop.f32.mrb[4].mxu1  ;;  %5097 = vtanh.f32 %v438_v41 }
  0xf3   : > { %v494_v47 = vadd.f32 %v4538_v46, %v4230_v29  ;;  %v485_v48 = vpop.f32.mrb[5].mxu1  ;;  %5099 = vtanh.f32 %v449_v43 }
  0xf4   : > { %v486_v49 = vadd.f32 %v4230_v29, %v485_v48  ;;  %v4539_v50 = vpop.f32.mrb[6].mxu1  ;;  %5101 = vtanh.f32 %v441_v45 }
  0xf5   : > { %5103 = vtanh.f32 %v494_v47  ;;  %v497_v51 = vadd.f32 %v4539_v50, %v4230_v29  ;;  %v488_v52 = vpop.f32.mrb[7].mxu1  ;;  %v4530_v53 = vpop.f32.mrb[4].mxu0 }
  0xf6   : > { %5105 = vtanh.f32 %v486_v49  ;;  %v489_v54 = vadd.f32 %v4230_v29, %v488_v52  ;;  %v462_v55 = vadd.f32 %v4530_v53, %v4230_v29  ;;  %v453_v56 = vpop.f32.mrb[5].mxu0 }
  0xf7   : > { %v5088_v57 = vpop.eup %5087  ;;  %5107 = vtanh.f32 %v497_v51  ;;  %v454_v58 = vadd.f32 %v4230_v29, %v453_v56  ;;  %v4531_v59 = vpop.f32.mrb[6].mxu0 }
  0xf8   : > { %v5090_v60 = vpop.eup %5089  ;;  %5109 = vtanh.f32 %v489_v54  ;;  %v465_v62 = vadd.f32 %v4531_v59, %v4230_v29  ;;  %v456_v63 = vpop.f32.mrb[7].mxu0 }
  0xf9   : > { %v5092_v0 = vpop.eup %5091  ;;  %5111 = vtanh.f32 %v462_v55  ;;  %v457_v1 = vadd.f32 %v4230_v29, %v456_v63 }
  0xfa   : > { %v5094_v2 = vpop.eup %5093  ;;  %v4544_v3 = vpop.f32.mrb[8].mxu1  ;;  %5113 = vtanh.f32 %v454_v58  ;;  %v5430_v4 = vpack.c.bf16 %v5092_v0, %v5088_v57 }
  0xfb   : > { %v5096_v5 = vpop.eup %5095  ;;  %v569_v7 = vadd.f32 %v4544_v3, %v5428_v61  ;;  %v560_v8 = vpop.f32.mrb[9].mxu1  ;;  %5115 = vtanh.f32 %v465_v62  ;;  %v5433_v9 = vpack.c.bf16 %v5094_v2, %v5090_v60 }
  0xfc   : > { %v5098_v12 = vpop.eup %5097  ;;  %v561_v13 = vadd.f32 %v5428_v61, %v560_v8  ;;  %v4545_v14 = vpop.f32.mrb[10].mxu1  ;;  %5117 = vtanh.f32 %v457_v1 }
  0xfd   : > { %v5100_v15 = vpop.eup %5099  ;;  %5119 = vtanh.f32 %v569_v7  ;;  %v572_v16 = vadd.f32 %v4545_v14, %v5428_v61  ;;  %v563_v18 = vpop.f32.mrb[11].mxu1 }
  0xfe   : > { %v5102_v19 = vpop.eup %5101  ;;  %5121 = vtanh.f32 %v561_v13  ;;  %v564_v20 = vadd.f32 %v5428_v61, %v563_v18  ;;  %v5438_v21 = vpack.c.bf16 %v5100_v15, %v5096_v5 }
  0xff   : > { %v5104_v25 = vpop.eup %5103  ;;  %5123 = vtanh.f32 %v572_v16  ;;  %v5440_v26 = vpack.c.bf16 %v5102_v19, %v5098_v12 }
 0x100   : > { %v5106_v29 = vpop.eup %5105  ;;  %5125 = vtanh.f32 %v564_v20 }
 0x101   : > { %v5108_v30 = vpop.eup %5107 }
 0x102   : > { %v5110_v31 = vpop.eup %5109  ;;  %v4548_v32 = vpop.f32.mrb[12].mxu1  ;;  %v5442_v33 = vpack.c.bf16 %v5108_v30, %v5104_v25 }
 0x103   : > { %v5112_v34 = vpop.eup %5111  ;;  %v585_v35 = vadd.f32 %v4548_v32, %v5428_v61  ;;  %v576_v36 = vpop.f32.mrb[13].mxu1  ;;  %v5445_v37 = vpack.c.bf16 %v5110_v31, %v5106_v29 }
 0x104   : > { %v5114_v38 = vpop.eup %5113  ;;  %v577_v39 = vadd.f32 %v5428_v61, %v576_v36  ;;  %v4549_v40 = vpop.f32.mrb[14].mxu1 }
 0x105   : > { %v5116_v41 = vpop.eup %5115  ;;  %5127 = vtanh.f32 %v585_v35  ;;  %v588_v42 = vadd.f32 %v4549_v40, %v5428_v61  ;;  %v579_v43 = vpop.f32.mrb[15].mxu1 }
 0x106   : > { %v5118_v44 = vpop.eup %5117  ;;  %5129 = vtanh.f32 %v577_v39  ;;  %v580_v45 = vadd.f32 %v5428_v61, %v579_v43  ;;  %v5450_v46 = vpack.c.bf16 %v5116_v41, %v5112_v34 }
 0x107   : > { %v5120_v47 = vpop.eup %5119  ;;  %5131 = vtanh.f32 %v588_v42  ;;  %v5452_v48 = vpack.c.bf16 %v5118_v44, %v5114_v38 }
 0x108   : > { %v5122_v49 = vpop.eup %5121  ;;  %5133 = vtanh.f32 %v580_v45 }
 0x109   : > { %v5124_v50 = vpop.eup %5123 }
 0x10a   : > { %v5126_v51 = vpop.eup %5125  ;;  %v4552_v52 = vpop.f32.mrb[16].mxu1  ;;  %v5454_v53 = vpack.c.bf16 %v5124_v50, %v5120_v47  ;;  %v656_v50 = vsel %vm375_vm0, %v5440_v26, 0 }
 0x10b   : > { %v601_v54 = vadd.f32 %v4552_v52, %v5428_v61  ;;  %v592_v55 = vpop.f32.mrb[17].mxu1  ;;  %v5457_v56 = vpack.c.bf16 %v5126_v51, %v5122_v49  ;;  %v703_v49 = vsel %vm375_vm0, %v5438_v21, 0 }
 0x10c   : > { %v593_v57 = vadd.f32 %v5428_v61, %v592_v55  ;;  %v4553_v58 = vpop.f32.mrb[18].mxu1  ;;  %v706_v59 = vsel %vm375_vm0, %v5454_v53, 0 }
 0x10d   : > { %5135 = vtanh.f32 %v601_v54  ;;  %v604_v60 = vadd.f32 %v4553_v58, %v5428_v61  ;;  %v595_v62 = vpop.f32.mrb[19].mxu1  ;;  %4565 = vmatpush3.bf16.xpose.msra.mxu1 %v706_v59  ;;  %v659_v63 = vsel %vm375_vm0, %v5457_v56, 0 }
 0x10e   : > { %5137 = vtanh.f32 %v593_v57  ;;  %v596_v0 = vadd.f32 %v5428_v61, %v595_v62  ;;  %4559 = vmatpush3.bf16.xpose.msra.mxu0 %v659_v63  ;;  %4576 = vmatprep.subr.bf16.mxu1 %v6413_v28 }
 0x10f   : > { %v5128_v1 = vpop.eup %5127  ;;  %5139 = vtanh.f32 %v604_v60  ;;  %4570 = vmatprep.subr.bf16.mxu0 %v6413_v28 }
 0x110   : > { %v5130_v2 = vpop.eup %5129  ;;  %5141 = vtanh.f32 %v596_v0 }
 0x111   : > { %v5132_v3 = vpop.eup %5131 }
 0x112   : > { %v5134_v5 = vpop.eup %5133  ;;  %v4556_v7 = vpop.f32.mrb[20].mxu1  ;;  %v5468_v8 = vpack.c.bf16 %v5132_v3, %v5128_v1 }
 0x113   : > { %v617_v12 = vadd.f32 %v4556_v7, %v5428_v61  ;;  %v608_v13 = vpop.f32.mrb[21].mxu1  ;;  %v5471_v14 = vpack.c.bf16 %v5134_v5, %v5130_v2 }
 0x114   : > { %v609_v15 = vadd.f32 %v5428_v61, %v608_v13  ;;  %v4557_v16 = vpop.f32.mrb[22].mxu1  ;;  %4567 = vmatmul.mubr.msk.bf16.vlgmr.msra.gmra.mrb[24].mxu1 %vm375_vm0, %v5438_v21  ;;  %v800_v18 = vsel %vm375_vm0, %v5468_v8, 0  ;;  %v797_v21 = vsel %vm375_vm0, %v5450_v46, 0 }
 0x115   : > { %5143 = vtanh.f32 %v617_v12  ;;  %v620_v19 = vadd.f32 %v4557_v16, %v5428_v61  ;;  %v611_v20 = vpop.f32.mrb[23].mxu1  ;;  %4561 = vmatmul.mubr.msk.bf16.vlgmr.msra.gmra.mrb[8].mxu0 %vm375_vm0, %v5440_v26  ;;  %4577 = vmatpush3.bf16.xpose.msra.mxu1 %v800_v18  ;;  %v753_v25 = vsel %vm375_vm0, %v5471_v14, 0  ;;  %v750_v26 = vsel %vm375_vm0, %v5452_v48, 0 }
 0x116   : > { %5145 = vtanh.f32 %v609_v15  ;;  %v612_v29 = vadd.f32 %v5428_v61, %v611_v20  ;;  %4571 = vmatpush3.bf16.xpose.msra.mxu0 %v753_v25  ;;  %4578 = vmatprep.mubr.msk.bf16.mxu1 %vm5272_vm1, %v6413_v28 }
 0x117   : > { %v5136_v30 = vpop.eup %5135  ;;  %5147 = vtanh.f32 %v620_v19  ;;  %4572 = vmatprep.mubr.msk.bf16.mxu0 %vm5272_vm1, %v6413_v28  ;;  %4588 = vmatprep.subr.bf16.mxu1 %v6413_v28 }
 0x118   : > { %v5138_v31 = vpop.eup %5137  ;;  %5149 = vtanh.f32 %v612_v29  ;;  %4582 = vmatprep.subr.bf16.mxu0 %v6413_v28 }
 0x119   : > { %v5140_v32 = vpop.eup %5139 }
 0x11a   : > { %v5142_v34 = vpop.eup %5141  ;;  %v652_v35 = vpack.c.bf16 %v5140_v32, %v5136_v30 }
 0x11b   : > { %v651_v36 = vpack.c.bf16 %v5142_v34, %v5138_v31 }
 0x11c   : > { %4579 = vmatmul.mubr.msk.bf16.vlgmr.msra.gmra.mrb[28].mxu1 %vm375_vm0, %v5450_v46  ;;  %v894_v61 = vsel %vm375_vm0, %v652_v35, 0  ;;  %v891_v46 = vsel %vm375_vm0, %v5430_v4, 0 }
 0x11d   : > { %4573 = vmatmul.mubr.msk.bf16.vlgmr.msra.gmra.mrb[12].mxu0 %vm375_vm0, %v5452_v48  ;;  %4589 = vmatpush3.bf16.xpose.msra.mxu1 %v894_v61  ;;  %v847_v38 = vsel %vm375_vm0, %v651_v36, 0  ;;  %v844_v48 = vsel %vm375_vm0, %v5433_v9, 0 }
 0x11e   : > { %4583 = vmatpush3.bf16.xpose.msra.mxu0 %v847_v38  ;;  %4590 = vmatprep.mubr.msk.bf16.mxu1 %vm5272_vm1, %v6413_v28 }
 0x11f   : > { %v5144_v39 = vpop.eup %5143  ;;  %4584 = vmatprep.mubr.msk.bf16.mxu0 %vm5272_vm1, %v6413_v28  ;;  %4600 = vmatprep.subr.bf16.mxu1 %v6413_v28 }
 0x120   : > { %v5146_v40 = vpop.eup %5145  ;;  %4594 = vmatprep.subr.bf16.mxu0 %v6413_v28 }
 0x121   : > { %v5148_v41 = vpop.eup %5147 }
 0x122   : > { %v5150_v42 = vpop.eup %5149  ;;  %v654_v43 = vpack.c.bf16 %v5148_v41, %v5144_v39 }
 0x123   : > { %v653_v44 = vpack.c.bf16 %v5150_v42, %v5146_v40 }
 0x124   : > { %4591 = vmatmul.mubr.msk.bf16.vlgmr.msra.gmra.mrb[32].mxu1 %vm375_vm0, %v5430_v4  ;;  %v988_v45 = vsel %vm375_vm0, %v654_v43, 0  ;;  %v985_v4 = vsel %vm375_vm0, %v5442_v33, 0 }
 0x125   : > { %4585 = vmatmul.mubr.msk.bf16.vlgmr.msra.gmra.mrb[16].mxu0 %vm375_vm0, %v5433_v9  ;;  %4601 = vmatpush3.bf16.xpose.msra.mxu1 %v988_v45  ;;  %v941_v47 = vsel %vm375_vm0, %v653_v44, 0  ;;  %v938_v9 = vsel %vm375_vm0, %v5445_v37, 0 }
 0x126   : > { %4595 = vmatpush3.bf16.xpose.msra.mxu0 %v941_v47  ;;  %4602 = vmatprep.mubr.msk.bf16.mxu1 %vm5272_vm1, %v6413_v28 }
 0x127   : > { %4596 = vmatprep.mubr.msk.bf16.mxu0 %vm5272_vm1, %v6413_v28  ;;  %4612 = vmatprep.subr.bf16.mxu1 %v6413_v28 }
 0x128   : > { %4606 = vmatprep.subr.bf16.mxu0 %v6413_v28 }
 0x12c   : > { %4603 = vmatmul.mubr.msk.bf16.vlgmr.msra.gmra.mrb[36].mxu1 %vm375_vm0, %v5442_v33 }
 0x12d   : > { %4597 = vmatmul.mubr.msk.bf16.vlgmr.msra.gmra.mrb[20].mxu0 %vm375_vm0, %v5445_v37  ;;  %4613 = vmatpush3.bf16.xpose.msra.mxu1 %v703_v49 }
 0x12e   : > { %4607 = vmatpush3.bf16.xpose.msra.mxu0 %v656_v50  ;;  %4614 = vmatprep.mubr.msk.bf16.mxu1 %vm5272_vm1, %v6413_v28 }
 0x12f   : > { %4608 = vmatprep.mubr.msk.bf16.mxu0 %vm5272_vm1, %v6413_v28  ;;  %4624 = vmatprep.subr.bf16.mxu1 %v6413_v28 }
 0x130   : > { %4618 = vmatprep.subr.bf16.mxu0 %v6413_v28 }
 0x134   : > { %4615 = vmatmul.mubr.msk.bf16.vlgmr.msra.gmra.mrb[40].mxu1 %vm375_vm0, %v5454_v53 }
 0x135   : > { %4609 = vmatmul.mubr.msk.bf16.vlgmr.msra.gmra.mrb[24].mxu0 %vm375_vm0, %v5457_v56  ;;  %4625 = vmatpush3.bf16.xpose.msra.mxu1 %v797_v21 }
 0x136   : > { %4619 = vmatpush3.bf16.xpose.msra.mxu0 %v750_v26  ;;  %4626 = vmatprep.mubr.msk.bf16.mxu1 %vm5272_vm1, %v6413_v28 }
 0x137   : > { %4620 = vmatprep.mubr.msk.bf16.mxu0 %vm5272_vm1, %v6413_v28  ;;  %4636 = vmatprep.subr.bf16.mxu1 %v6413_v28 }
 0x138   : > { %4630 = vmatprep.subr.bf16.mxu0 %v6413_v28 }
 0x13c   : > { %4627 = vmatmul.mubr.msk.bf16.vlgmr.msra.gmra.mrb[44].mxu1 %vm375_vm0, %v5468_v8 }
 0x13d   : > { %4621 = vmatmul.mubr.msk.bf16.vlgmr.msra.gmra.mrb[28].mxu0 %vm375_vm0, %v5471_v14  ;;  %4637 = vmatpush3.bf16.xpose.msra.mxu1 %v891_v46 }
 0x13e   : > { %4631 = vmatpush3.bf16.xpose.msra.mxu0 %v844_v48  ;;  %4638 = vmatprep.mubr.msk.bf16.mxu1 %vm5272_vm1, %v6413_v28 }
 0x13f   : > { %4632 = vmatprep.mubr.msk.bf16.mxu0 %vm5272_vm1, %v6413_v28  ;;  %4648 = vmatprep.subr.bf16.mxu1 %v6413_v28 }
 0x140   : > { %4642 = vmatprep.subr.bf16.mxu0 %v6413_v28 }
 0x144   : > { %4639 = vmatmul.mubr.msk.bf16.vlgmr.msra.gmra.mrb[48].mxu1 %vm375_vm0, %v652_v35 }
 0x145   : > { %4633 = vmatmul.mubr.msk.bf16.vlgmr.msra.gmra.mrb[32].mxu0 %vm375_vm0, %v651_v36  ;;  %4649 = vmatpush3.bf16.xpose.msra.mxu1 %v985_v4 }
 0x146   : > { %4643 = vmatpush3.bf16.xpose.msra.mxu0 %v938_v9  ;;  %4650 = vmatprep.mubr.msk.bf16.mxu1 %vm5272_vm1, %v6413_v28 }
 0x147   : > { %4644 = vmatprep.mubr.msk.bf16.mxu0 %vm5272_vm1, %v6413_v28  ;;  %4660 = vmatprep.subr.bf16.mxu1 %v6413_v28 }
 0x148   : > { %4654 = vmatprep.subr.bf16.mxu0 %v6413_v28 }
 0x14c   : > { %4651 = vmatmul.mubr.msk.bf16.vlgmr.msra.gmra.mrb[52].mxu1 %vm375_vm0, %v654_v43 }
 0x14d   : > { %4645 = vmatmul.mubr.msk.bf16.vlgmr.msra.gmra.mrb[36].mxu0 %vm375_vm0, %v653_v44  ;;  %4661 = vmatpush3.bf16.msra.mxu1 %v5380_v22 }
 0x14e   : > { %4655 = vmatpush3.bf16.msra.mxu0 %v5372_v17  ;;  %4662 = vmatprep.mubr.msk.bf16.mxu1 %vm5272_vm1, %v6413_v28 }
 0x14f   : > { %4656 = vmatprep.mubr.msk.bf16.mxu0 %vm5272_vm1, %v6413_v28  ;;  %4672 = vmatprep.subr.bf16.mxu1 %v6413_v28 }
 0x150   : > { %4666 = vmatprep.subr.bf16.mxu0 %v6413_v28 }
 0x1e7   : > { %v742_v33 = vpop.f32.mrb[24].mxu1 }
 0x1e8   : > { %v5578_v37 = vpop.f32.mrb[8].mxu0  ;;  %v4568_v51 = vpop.f32.mrb[25].mxu1  ;;  %v1593_v54 = vsel %vm1359_vm2, %v742_v33, -inf }
 0x1e9   : > { %v4562_v52 = vpop.f32.mrb[9].mxu0  ;;  %v745_v53 = vpop.f32.mrb[26].mxu1  ;;  %v1584_v58 = vsel %vm1359_vm2, %v5578_v37, -inf }
 0x1ea   : > { %v1594_v55 = vsel %vm1359_vm2, %v745_v53, -inf  ;;  %v698_v56 = vpop.f32.mrb[10].mxu0  ;;  %v4569_v57 = vpop.f32.mrb[27].mxu1 }
 0x1eb   : > { %v1595_v59 = vmax.f32 %v1593_v54, %v1594_v55  ;;  %v1585_v60 = vsel %vm1359_vm2, %v698_v56, -inf  ;;  %v4563_v62 = vpop.f32.mrb[11].mxu0 }
 0x1ec   : > { %v1586_v63 = vmax.f32 %v1584_v58, %v1585_v60 }
 0x1ed   : > { %v1596_v0 = vrot.slane %v1595_v59, 4 }
 0x1ee   : > { %v1587_v1 = vrot.slane %v1586_v63, 4 }
 0x1ef   : > { %v1597_v2 = vmax.f32 %v1595_v59, %v1596_v0  ;;  %v5585_v3 = vpop.f32.mrb[28].mxu1 }
 0x1f0   : > { %v1588_v5 = vmax.f32 %v1586_v63, %v1587_v1  ;;  %v5587_v7 = vpop.f32.mrb[12].mxu0  ;;  %v4580_v8 = vpop.f32.mrb[29].mxu1  ;;  %v1611_v16 = vsel %vm1359_vm2, %v5585_v3, -inf }
 0x1f1   : > { %v1598_v12 = vrot.slane %v1597_v2, 2  ;;  %v4574_v13 = vpop.f32.mrb[13].mxu0  ;;  %v5589_v14 = vpop.f32.mrb[30].mxu1  ;;  %v1602_v29 = vsel %vm1359_vm2, %v5587_v7, -inf }
 0x1f2   : > { %v1589_v15 = vrot.slane %v1588_v5, 2  ;;  %v1612_v18 = vsel %vm1359_vm2, %v5589_v14, -inf  ;;  %v5595_v19 = vpop.f32.mrb[14].mxu0  ;;  %v4581_v20 = vpop.f32.mrb[31].mxu1 }
 0x1f3   : > { %v1599_v25 = vmax.f32 %v1597_v2, %v1598_v12  ;;  %v1613_v30 = vmax.f32 %v1611_v16, %v1612_v18  ;;  %v1603_v31 = vsel %vm1359_vm2, %v5595_v19, -inf  ;;  %v4575_v32 = vpop.f32.mrb[15].mxu0 }
 0x1f4   : > { %v1590_v34 = vmax.f32 %v1588_v5, %v1589_v15  ;;  %v1604_v35 = vmax.f32 %v1602_v29, %v1603_v31 }
 0x1f5   : > { %v1600_v36 = vrot.slane %v1599_v25, 1  ;;  %v1614_v61 = vrot.slane %v1613_v30, 4 }
 0x1f6   : > { %v1591_v38 = vrot.slane %v1590_v34, 1  ;;  %v1605_v39 = vrot.slane %v1604_v35, 4 }
 0x1f7   : > { %v1601_v40 = vmax.f32 %v1599_v25, %v1600_v36  ;;  %v1615_v41 = vmax.f32 %v1613_v30, %v1614_v61  ;;  %v5601_v42 = vpop.f32.mrb[32].mxu1 }
 0x1f8   : > { %v1592_v43 = vmax.f32 %v1590_v34, %v1591_v38  ;;  %v1606_v44 = vmax.f32 %v1604_v35, %v1605_v39  ;;  %v1629_v45 = vsel %vm1359_vm2, %v5601_v42, -inf  ;;  %v5605_v47 = vpop.f32.mrb[16].mxu0  ;;  %v4592_v49 = vpop.f32.mrb[33].mxu1 }
 0x1f9   : > { %v1658_v50 = vsub.f32 %v742_v33, %v1601_v40  ;;  %v1659_v21 = vsub.f32 %v745_v53, %v1601_v40  ;;  %v1616_v26 = vrot.slane %v1615_v41, 2  ;;  %v1620_v46 = vsel %vm1359_vm2, %v5605_v47, -inf  ;;  %v4586_v48 = vpop.f32.mrb[17].mxu0  ;;  %v5609_v4 = vpop.f32.mrb[34].mxu1 }
 0x1fa   : > { %v1656_v9 = vsub.f32 %v5578_v37, %v1592_v43  ;;  %v1657_v51 = vsub.f32 %v698_v56, %v1592_v43  ;;  %v1607_v52 = vrot.slane %v1606_v44, 2  ;;  %v1630_v54 = vsel %vm1359_vm2, %v5609_v4, -inf  ;;  %v5614_v55 = vpop.f32.mrb[18].mxu0  ;;  %v4593_v57 = vpop.f32.mrb[35].mxu1 }
 0x1fb   : > { %v1676_v58 = vmul.f32 1.442695, %v1658_v50  ;;  %v1678_v33 = vmul.f32 1.442695, %v1659_v21  ;;  %v1617_v53 = vmax.f32 %v1615_v41, %v1616_v26  ;;  %v1631_v59 = vmax.f32 %v1629_v45, %v1630_v54  ;;  %v4587_v60 = vpop.f32.mrb[19].mxu0 }
 0x1fc   : > { %v1672_v62 = vmul.f32 1.442695, %v1656_v9  ;;  %v1674_v63 = vmul.f32 1.442695, %v1657_v51  ;;  %v1608_v0 = vmax.f32 %v1606_v44, %v1607_v52  ;;  %v1621_v1 = vsel %vm1359_vm2, %v5614_v55, -inf }
 0x1fd   : > { %5151 = vpow2.f32 %v1676_v58  ;;  %v1618_v37 = vrot.slane %v1617_v53, 1  ;;  %v1632_v56 = vrot.slane %v1631_v59, 4  ;;  %v1622_v2 = vmax.f32 %v1620_v46, %v1621_v1 }
 0x1fe   : > { %5153 = vpow2.f32 %v1678_v33  ;;  %v1609_v5 = vrot.slane %v1608_v0, 1 }
 0x1ff   : > { %5155 = vpow2.f32 %v1672_v62  ;;  %v1619_v8 = vmax.f32 %v1617_v53, %v1618_v37  ;;  %v1633_v12 = vmax.f32 %v1631_v59, %v1632_v56  ;;  %v1623_v13 = vrot.slane %v1622_v2, 4  ;;  %v5618_v15 = vpop.f32.mrb[36].mxu1 }
 0x200   : > { %5157 = vpow2.f32 %v1674_v63  ;;  %v1610_v16 = vmax.f32 %v1608_v0, %v1609_v5  ;;  %v1647_v18 = vsel %vm1359_vm2, %v5618_v15, -inf  ;;  %v5622_v20 = vpop.f32.mrb[20].mxu0  ;;  %v4604_v25 = vpop.f32.mrb[37].mxu1 }
 0x201   : > { %v1662_v29 = vsub.f32 %v5585_v3, %v1619_v8  ;;  %v1663_v30 = vsub.f32 %v5589_v14, %v1619_v8  ;;  %v1634_v31 = vrot.slane %v1633_v12, 2  ;;  %v1624_v32 = vmax.f32 %v1622_v2, %v1623_v13  ;;  %v4598_v34 = vpop.f32.mrb[21].mxu0  ;;  %v5626_v35 = vpop.f32.mrb[38].mxu1 }
 0x202   : > { %v1660_v36 = vsub.f32 %v5587_v7, %v1610_v16  ;;  %v1661_v61 = vsub.f32 %v5595_v19, %v1610_v16  ;;  %v1638_v38 = vsel %vm1359_vm2, %v5622_v20, -inf  ;;  %v1648_v39 = vsel %vm1359_vm2, %v5626_v35, -inf  ;;  %v5634_v40 = vpop.f32.mrb[22].mxu0  ;;  %v4605_v3 = vpop.f32.mrb[39].mxu1 }
 0x203   : > { %v1684_v41 = vmul.f32 1.442695, %v1662_v29  ;;  %v1686_v14 = vmul.f32 1.442695, %v1663_v30  ;;  %v1635_v43 = vmax.f32 %v1633_v12, %v1634_v31  ;;  %v1625_v44 = vrot.slane %v1624_v32, 2  ;;  %v4599_v45 = vpop.f32.mrb[23].mxu0 }
 0x204   : > { %v1680_v49 = vmul.f32 1.442695, %v1660_v36  ;;  %v1682_v50 = vmul.f32 1.442695, %v1661_v61  ;;  %v1649_v21 = vmax.f32 %v1647_v18, %v1648_v39  ;;  %v1639_v7 = vsel %vm1359_vm2, %v5634_v40, -inf }
 0x205   : > { %5159 = vpow2.f32 %v1684_v41  ;;  %v1636_v19 = vrot.slane %v1635_v43, 1  ;;  %v1626_v26 = vmax.f32 %v1624_v32, %v1625_v44  ;;  %v1640_v46 = vmax.f32 %v1638_v38, %v1639_v7 }
 0x206   : > { %5161 = vpow2.f32 %v1686_v14  ;;  %v1650_v48 = vrot.slane %v1649_v21, 4 }
 0x207   : > { %v5638_v9 = vpop.eup %5151  ;;  %5163 = vpow2.f32 %v1680_v49  ;;  %v1637_v51 = vmax.f32 %v1635_v43, %v1636_v19  ;;  %v1627_v52 = vrot.slane %v1626_v26, 1  ;;  %v1641_v54 = vrot.slane %v1640_v46, 4  ;;  %v5640_v57 = vpop.f32.mrb[40].mxu1 }
 0x208   : > { %v5642_v58 = vpop.eup %5153  ;;  %v1713_v33 = vsel %vm1359_vm2, %v5638_v9, 0.0  ;;  %5165 = vpow2.f32 %v1682_v50  ;;  %v1651_v53 = vmax.f32 %v1649_v21, %v1650_v48  ;;  %v1369_v59 = vsel %vm1359_vm2, %v5640_v57, -inf  ;;  %v5648_v60 = vpop.f32.mrb[24].mxu0 }
 0x209   : > { %v4616_v62 = vpop.f32.mrb[41].mxu1  ;;  %v5650_v63 = vpop.eup %5155  ;;  %v1714_v0 = vsel %vm1359_vm2, %v5642_v58, 0.0  ;;  %v1666_v1 = vsub.f32 %v5601_v42, %v1637_v51  ;;  %v1667_v37 = vsub.f32 %v5609_v4, %v1637_v51  ;;  %v1628_v56 = vmax.f32 %v1626_v26, %v1627_v52 }
 0x20a   : > { %v4610_v2 = vpop.f32.mrb[25].mxu0  ;;  %v5656_v5 = vpop.f32.mrb[42].mxu1  ;;  %v1715_v12 = vadd.f32 %v1714_v0, %v1713_v33  ;;  %v1704_v13 = vsel %vm1359_vm2, %v5650_v63, 0.0  ;;  %v1652_v16 = vrot.slane %v1651_v53, 2  ;;  %v1642_v18 = vmax.f32 %v1640_v46, %v1641_v54 }
 0x20b   : > { %v5658_v8 = vpop.eup %5157  ;;  %v5662_v25 = vpop.f32.mrb[26].mxu0  ;;  %v1692_v30 = vmul.f32 1.442695, %v1666_v1  ;;  %v1694_v4 = vmul.f32 1.442695, %v1667_v37  ;;  %v1664_v31 = vsub.f32 %v5605_v47, %v1628_v56  ;;  %v1665_v61 = vsub.f32 %v5614_v55, %v1628_v56 }
 0x20c   : > { %v4617_v29 = vpop.f32.mrb[43].mxu1  ;;  %v1705_v42 = vsel %vm1359_vm2, %v5658_v8, 0.0  ;;  %v4611_v32 = vpop.f32.mrb[27].mxu0  ;;  %v1716_v34 = vrot.slane %v1715_v12, 4  ;;  %v1653_v38 = vmax.f32 %v1651_v53, %v1652_v16  ;;  %v1643_v3 = vrot.slane %v1642_v18, 2 }
 0x20d   : > { %v1706_v36 = vadd.f32 %v1705_v42, %v1704_v13  ;;  %5167 = vpow2.f32 %v1692_v30  ;;  %v1688_v39 = vmul.f32 1.442695, %v1664_v31  ;;  %v5670_v41 = vsel %vm1359_vm2, %v5648_v60, -inf }
 0x20e   : > { %v1717_v14 = vadd.f32 %v1716_v34, %v1715_v12  ;;  %5169 = vpow2.f32 %v1694_v4  ;;  %v1690_v44 = vmul.f32 1.442695, %v1665_v61  ;;  %v1654_v47 = vrot.slane %v1653_v38, 1 }
 0x20f   : > { %v1707_v43 = vrot.slane %v1706_v36, 4  ;;  %v5672_v45 = vpop.eup %5159  ;;  %5171 = vpow2.f32 %v1688_v39  ;;  %v1644_v49 = vmax.f32 %v1642_v18, %v1643_v3  ;;  %v1370_v55 = vsel %vm1359_vm2, %v5656_v5, -inf  ;;  %v5676_v50 = vpop.f32.mrb[44].mxu1 }
 0x210   : > { %v5678_v21 = vpop.eup %5161  ;;  %v1718_v7 = vrot.slane %v1717_v14, 2  ;;  %v1731_v26 = vsel %vm1359_vm2, %v5672_v45, 0.0  ;;  %5173 = vpow2.f32 %v1690_v44  ;;  %v5682_v46 = vpop.f32.mrb[28].mxu0  ;;  %v1655_v54 = vmax.f32 %v1653_v38, %v1654_v47 }
 0x211   : > { %v1708_v19 = vadd.f32 %v1707_v43, %v1706_v36  ;;  %v4628_v48 = vpop.f32.mrb[45].mxu1  ;;  %v5684_v51 = vpop.eup %5163  ;;  %v1732_v52 = vsel %vm1359_vm2, %v5678_v21, 0.0  ;;  %v1645_v33 = vrot.slane %v1644_v49, 1  ;;  %v1371_v53 = vmax.f32 %v1369_v59, %v1370_v55 }
 0x212   : > { %v4622_v62 = vpop.f32.mrb[29].mxu0  ;;  %v5688_v0 = vpop.f32.mrb[46].mxu1  ;;  %v1719_v37 = vadd.f32 %v1718_v7, %v1717_v14  ;;  %v1733_v2 = vadd.f32 %v1732_v52, %v1731_v26  ;;  %v1722_v12 = vsel %vm1359_vm2, %v5684_v51, 0.0  ;;  %v1670_v29 = vsub.f32 %v5618_v15, %v1655_v54 }
 0x213   : > { %v5690_v1 = vpop.eup %5165  ;;  %v1709_v56 = vrot.slane %v1708_v19, 2  ;;  %v5694_v13 = vpop.f32.mrb[30].mxu0  ;;  %v1671_v59 = vsub.f32 %v5626_v35, %v1655_v54  ;;  %v1646_v42 = vmax.f32 %v1644_v49, %v1645_v33  ;;  %v1372_v49 = vrot.slane %v1371_v53, 4 }
 0x214   : > { %v4629_v16 = vpop.f32.mrb[47].mxu1  ;;  %v1723_v18 = vsel %vm1359_vm2, %v5690_v1, 0.0  ;;  %v4623_v30 = vpop.f32.mrb[31].mxu0  ;;  %v1720_v4 = vrot.slane %v1719_v37, 1  ;;  %v1734_v32 = vrot.slane %v1733_v2, 4 }
 0x215   : > { %v1710_v31 = vadd.f32 %v1709_v56, %v1708_v19  ;;  %v1724_v34 = vadd.f32 %v1723_v18, %v1722_v12  ;;  %v1700_v36 = vmul.f32 1.442695, %v1670_v29  ;;  %v1702_v61 = vmul.f32 1.442695, %v1671_v59 }
 0x216   : > { %v1668_v38 = vsub.f32 %v5622_v20, %v1646_v42  ;;  %v1669_v39 = vsub.f32 %v5634_v40, %v1646_v42  ;;  %v1721_v3 = vadd.f32 %v1720_v4, %v1719_v37  ;;  %v1735_v43 = vadd.f32 %v1734_v32, %v1733_v2 }
 0x217   : > { %v1711_v14 = vrot.slane %v1710_v31, 1  ;;  %v1725_v44 = vrot.slane %v1724_v34, 4  ;;  %v5702_v47 = vpop.eup %5167  ;;  %5175 = vpow2.f32 %v1700_v36  ;;  %v5704_v55 = vpop.f32.mrb[48].mxu1  ;;  %v1373_v62 = vmax.f32 %v1371_v53, %v1372_v49 }
 0x218   : > { %v1696_v15 = vmul.f32 1.442695, %v1668_v38  ;;  %v1698_v35 = vmul.f32 1.442695, %v1669_v39  ;;  %v5706_v7 = vpop.eup %5169  ;;  %5177 = vrcp.f32 %v1721_v3  ;;  %v1736_v26 = vrot.slane %v1735_v43, 2  ;;  %v5708_v48 = vpop.f32.mrb[32].mxu0 }
 0x219   : > { %v1712_v19 = vadd.f32 %v1711_v14, %v1710_v31  ;;  %v1726_v20 = vadd.f32 %v1725_v44, %v1724_v34  ;;  %v4640_v40 = vpop.f32.mrb[49].mxu1  ;;  %v5710_v52 = vpop.eup %5171  ;;  %v1749_v54 = vsel %vm1359_vm2, %v5702_v47, 0.0  ;;  %v1750_v33 = vsel %vm1359_vm2, %v5706_v7, 0.0 }
 0x21a   : > { %5179 = vpow2.f32 %v1702_v61  ;;  %v4634_v37 = vpop.f32.mrb[33].mxu0  ;;  %v5716_v56 = vpop.f32.mrb[50].mxu1  ;;  %v1737_v12 = vadd.f32 %v1736_v26, %v1735_v43  ;;  %v1751_v18 = vadd.f32 %v1750_v33, %v1749_v54  ;;  %v1740_v42 = vsel %vm1359_vm2, %v5710_v52, 0.0 }
 0x21b   : > { %v5718_v2 = vpop.eup %5173  ;;  %5181 = vrcp.f32 %v1712_v19  ;;  %v1727_v16 = vrot.slane %v1726_v20, 2  ;;  %v5720_v29 = vpop.f32.mrb[34].mxu0  ;;  %v1374_v53 = vrot.slane %v1373_v62, 2  ;;  %v1361_v38 = vsel %vm1359_vm2, %v5662_v25, -inf }
 0x21c   : > { %v4641_v59 = vpop.f32.mrb[51].mxu1  ;;  %v1741_v30 = vsel %vm1359_vm2, %v5718_v2, 0.0  ;;  %5183 = vpow2.f32 %v1696_v15  ;;  %v4635_v4 = vpop.f32.mrb[35].mxu0  ;;  %v1738_v31 = vrot.slane %v1737_v12, 1  ;;  %v1752_v34 = vrot.slane %v1751_v18, 4 }
 0x21d   : > { %v1728_v32 = vadd.f32 %v1727_v16, %v1726_v20  ;;  %v1742_v36 = vadd.f32 %v1741_v30, %v1740_v42  ;;  %5185 = vpow2.f32 %v1698_v35  ;;  %v1375_v61 = vmax.f32 %v1373_v62, %v1374_v53 }
 0x21e   : > { %v1387_v39 = vsel %vm1359_vm2, %v5676_v50, -inf  ;;  %v1739_v3 = vadd.f32 %v1738_v31, %v1737_v12  ;;  %v1753_v43 = vadd.f32 %v1752_v34, %v1751_v18  ;;  %v1362_v15 = vmax.f32 %v5670_v41, %v1361_v38 }
 0x21f   : > { %v1729_v14 = vrot.slane %v1728_v32, 1  ;;  %v1743_v44 = vrot.slane %v1742_v36, 4  ;;  %v1376_v49 = vrot.slane %v1375_v61, 1  ;;  %v1378_v19 = vsel %vm1359_vm2, %v5682_v46, -inf  ;;  %v5735_v26 = vpop.f32.mrb[52].mxu1 }
 0x220   : > { %v1388_v35 = vsel %vm1359_vm2, %v5688_v0, -inf  ;;  %5187 = vrcp.f32 %v1739_v3  ;;  %v1754_v40 = vrot.slane %v1753_v43, 2  ;;  %v5737_v33 = vpop.f32.mrb[36].mxu0  ;;  %v4652_v62 = vpop.f32.mrb[53].mxu1  ;;  %v1363_v16 = vrot.slane %v1362_v15, 4 }
 0x221   : > { %v1730_v20 = vadd.f32 %v1729_v14, %v1728_v32  ;;  %v1744_v54 = vadd.f32 %v1743_v44, %v1742_v36  ;;  %v5739_v37 = vpop.eup %5175  ;;  %v1377_v12 = vmax.f32 %v1375_v61, %v1376_v49  ;;  %v1389_v41 = vmax.f32 %v1387_v39, %v1388_v35  ;;  %v4646_v59 = vpop.f32.mrb[37].mxu0 }
 0x222   : > { %v1379_v18 = vsel %vm1359_vm2, %v5694_v13, -inf  ;;  %v5743_v42 = vpop.f32.mrb[54].mxu1  ;;  %v5745_v30 = vpop.eup %5177  ;;  %v1755_v53 = vadd.f32 %v1754_v40, %v1753_v43  ;;  %v1767_v31 = vsel %vm1359_vm2, %v5739_v37, 0.0  ;;  %v1364_v3 = vmax.f32 %v1362_v15, %v1363_v16 }
 0x223   : > { %5189 = vrcp.f32 %v1730_v20  ;;  %v1745_v4 = vrot.slane %v1744_v54, 2  ;;  %v5749_v32 = vpop.f32.mrb[38].mxu0  ;;  %v4653_v34 = vpop.f32.mrb[55].mxu1  ;;  %v5755_v61 = vmul.f32 %v5745_v30, %v5642_v58  ;;  %v1434_v38 = vsub.f32 %v5640_v57, %v1377_v12 }
 0x224   : > { %v5751_v36 = vpop.eup %5179  ;;  %v1435_v39 = vsub.f32 %v5656_v5, %v1377_v12  ;;  %v4647_v14 = vpop.f32.mrb[39].mxu0  ;;  %v1756_v44 = vrot.slane %v1755_v53, 1  ;;  %v1390_v20 = vrot.slane %v1389_v41, 4  ;;  %v1365_v16 = vrot.slane %v1364_v3, 2 }
 0x225   : > { %v5759_v43 = vpop.eup %5181  ;;  %v1746_v49 = vadd.f32 %v1745_v4, %v1744_v54  ;;  %v1768_v35 = vsel %vm1359_vm2, %v5751_v36, 0.0  ;;  %v1452_v57 = vmul.f32 1.442695, %v1434_v38  ;;  %v1380_v14 = vmax.f32 %v1378_v19, %v1379_v18 }
 0x226   : > { %v5763_v40 = vpop.eup %5183  ;;  %v5767_v58 = vmul.f32 %v5759_v43, %v5658_v8  ;;  %v1769_v62 = vadd.f32 %v1768_v35, %v1767_v31  ;;  %v1454_v59 = vmul.f32 1.442695, %v1435_v39  ;;  %v1757_v5 = vadd.f32 %v1756_v44, %v1755_v53 }
 0x227   : > { %v1747_v15 = vrot.slane %v1746_v49, 1  ;;  %v1758_v12 = vsel %vm1359_vm2, %v5763_v40, 0.0  ;;  %v5771_v54 = vpop.eup %5185  ;;  %5191 = vpow2.f32 %v1452_v57  ;;  %v1391_v34 = vmax.f32 %v1389_v41, %v1390_v20 }
 0x228   : > { %v1770_v4 = vrot.slane %v1769_v62, 4  ;;  %5193 = vrcp.f32 %v1757_v5  ;;  %v1759_v8 = vsel %vm1359_vm2, %v5771_v54, 0.0  ;;  %v1366_v31 = vmax.f32 %v1364_v3, %v1365_v16 }
 0x229   : > { %v1748_v28 = vadd.f32 %v1747_v15, %v1746_v49  ;;  %v1760_v39 = vadd.f32 %v1759_v8, %v1758_v12  ;;  %5195 = vpow2.f32 %v1454_v59  ;;  %v1392_v53 = vrot.slane %v1391_v34, 2 }
 0x22a   : > { %v1771_v38 = vadd.f32 %v1770_v4, %v1769_v62  ;;  %v5775_v44 = vpop.eup %5187  ;;  %v1367_v35 = vrot.slane %v1366_v31, 1  ;;  %v1381_v22 = vrot.slane %v1380_v14, 4  ;;  %v1405_v57 = vsel %vm1359_vm2, %v5704_v55, -inf }
 0x22b   : > { %5197 = vrcp.f32 %v1748_v28  ;;  %v5781_v19 = vmul.f32 %v5775_v44, %v5678_v21  ;;  %v1761_v18 = vrot.slane %v1760_v39, 4  ;;  %v1393_v49 = vmax.f32 %v1391_v34, %v1392_v53 }
 0x22c   : > { %v1772_v41 = vrot.slane %v1771_v38, 2  ;;  %v1368_v20 = vmax.f32 %v1366_v31, %v1367_v35  ;;  %v1382_v62 = vmax.f32 %v1380_v14, %v1381_v22  ;;  %v1396_v59 = vsel %vm1359_vm2, %v5708_v48, -inf }
 0x22d   : > { %v5783_v3 = vpop.eup %5189  ;;  %v1406_v28 = vsel %vm1359_vm2, %v5716_v56, -inf  ;;  %v1762_v21 = vadd.f32 %v1761_v18, %v1760_v39  ;;  %v1394_v12 = vrot.slane %v1393_v49, 1  ;;  %v1397_v53 = vsel %vm1359_vm2, %v5720_v29, -inf }
 0x22e   : > { %v5791_v5 = vmul.f32 %v5783_v3, %v5690_v1  ;;  %v1773_v15 = vadd.f32 %v1772_v41, %v1771_v38  ;;  %v1432_v16 = vsub.f32 %v5648_v60, %v1368_v20  ;;  %v1433_v4 = vsub.f32 %v5662_v25, %v1368_v20 }
 0x22f   : > { %v1383_v34 = vrot.slane %v1382_v62, 2  ;;  %v1407_v8 = vmax.f32 %v1405_v57, %v1406_v28  ;;  %v1763_v14 = vrot.slane %v1762_v21, 2  ;;  %v1395_v31 = vmax.f32 %v1393_v49, %v1394_v12 }
 0x230   : > { %v1774_v22 = vrot.slane %v1773_v15, 1  ;;  %v1448_v35 = vmul.f32 1.442695, %v1432_v16  ;;  %v1450_v17 = vmul.f32 1.442695, %v1433_v4 }
 0x231   : > { %v1384_v11 = vmax.f32 %v1382_v62, %v1383_v34  ;;  %v1408_v1 = vrot.slane %v1407_v8, 4  ;;  %v5797_v24 = vpop.eup %5191  ;;  %v1764_v39 = vadd.f32 %v1763_v14, %v1762_v21  ;;  %v1438_v60 = vsub.f32 %v5676_v50, %v1395_v31 }
 0x232   : > { %v1775_v38 = vadd.f32 %v1774_v22, %v1773_v15  ;;  %v1439_v25 = vsub.f32 %v5688_v0, %v1395_v31  ;;  %v5801_v41 = vpop.eup %5193  ;;  %v1489_v57 = vsel %vm1359_vm2, %v5797_v24, 0.0  ;;  %5199 = vpow2.f32 %v1448_v35 }
 0x233   : > { %v1385_v18 = vrot.slane %v1384_v11, 1  ;;  %v1409_v49 = vmax.f32 %v1407_v8, %v1408_v1  ;;  %v5805_v20 = vpop.eup %5195  ;;  %v5809_v62 = vmul.f32 %v5801_v41, %v5706_v7  ;;  %v1765_v28 = vrot.slane %v1764_v39, 1 }
 0x234   : > { %5201 = vrcp.f32 %v1775_v38  ;;  %v1460_v15 = vmul.f32 1.442695, %v1438_v60  ;;  %v1490_v0 = vsel %vm1359_vm2, %v5805_v20, 0.0  ;;  %v1462_v21 = vmul.f32 1.442695, %v1439_v25 }
 0x235   : > { %v5198_v50 = vpop.eup %5197  ;;  %5203 = vpow2.f32 %v1450_v17  ;;  %v1386_v12 = vmax.f32 %v1384_v11, %v1385_v18  ;;  %v1766_v34 = vadd.f32 %v1765_v28, %v1764_v39  ;;  %v1491_v8 = vadd.f32 %v1490_v0, %v1489_v57 }
 0x236   : > { %v1789_v16 = vmul.f32 %v5198_v50, %v5710_v52  ;;  %v1790_v4 = vmul.f32 %v5198_v50, %v5718_v2  ;;  %5205 = vpow2.f32 %v1460_v15  ;;  %v1410_v14 = vrot.slane %v1409_v49, 2 }
 0x237   : > { %v1436_v7 = vsub.f32 %v5682_v46, %v1386_v12  ;;  %v1437_v22 = vsub.f32 %v5694_v13, %v1386_v12  ;;  %5207 = vrcp.f32 %v1766_v34  ;;  %v1492_v35 = vrot.slane %v1491_v8, 4 }
 0x238   : > { %v5817_v31 = vpack.c.bf16 %v1790_v4, %v1789_v16  ;;  %v1398_v1 = vmax.f32 %v1396_v59, %v1397_v53  ;;  %5209 = vpow2.f32 %v1462_v21  ;;  %v1411_v38 = vmax.f32 %v1409_v49, %v1410_v14 }
 0x239   : > { %v1456_v17 = vmul.f32 1.442695, %v1436_v7  ;;  %v1458_v11 = vmul.f32 1.442695, %v1437_v22  ;;  %v1493_v52 = vadd.f32 %v1492_v35, %v1491_v8  ;;  %v1423_v2 = vsel %vm1359_vm2, %v5735_v26, -inf }
 0x23a   : > { %v1399_v60 = vrot.slane %v1398_v1, 4  ;;  %v1414_v46 = vsel %vm1359_vm2, %v5737_v33, -inf  ;;  %v1412_v13 = vrot.slane %v1411_v38, 1  ;;  %v1424_v39 = vsel %vm1359_vm2, %v5743_v42, -inf }
 0x23b   : > { %5211 = vpow2.f32 %v1456_v17  ;;  %v1415_v59 = vsel %vm1359_vm2, %v5749_v32, -inf  ;;  %v1494_v53 = vrot.slane %v1493_v52, 2  ;;  %v1425_v57 = vmax.f32 %v1423_v2, %v1424_v39 }
 0x23c   : > { %5213 = vpow2.f32 %v1458_v11  ;;  %v1400_v25 = vmax.f32 %v1398_v1, %v1399_v60  ;;  %v5827_v18 = vpop.eup %5199  ;;  %v1413_v49 = vmax.f32 %v1411_v38, %v1412_v13  ;;  %v1416_v28 = vmax.f32 %v1414_v46, %v1415_v59 }
 0x23d   : > { %v1777_v15 = vmul.f32 %v5759_v43, %v5650_v63  ;;  %v5833_v50 = vmul.f32 %v5745_v30, %v5638_v9  ;;  %v1495_v21 = vadd.f32 %v1494_v53, %v1493_v52  ;;  %v1480_v12 = vsel %vm1359_vm2, %v5827_v18, 0.0 }
 0x23e   : > { %v5835_v0 = vpop.eup %5201  ;;  %v1401_v16 = vrot.slane %v1400_v25, 2  ;;  %v1426_v4 = vrot.slane %v1425_v57, 4  ;;  %v1442_v63 = vsub.f32 %v5704_v55, %v1413_v49  ;;  %v1443_v43 = vsub.f32 %v5716_v56, %v1413_v49 }
 0x23f   : > { %v5839_v34 = vpop.eup %5203  ;;  %v5843_v8 = vmul.f32 %v5835_v0, %v5751_v36  ;;  %v1417_v9 = vrot.slane %v1416_v28, 4  ;;  %v1496_v30 = vrot.slane %v1495_v21, 1 }
 0x240   : > { %v1481_v7 = vsel %vm1359_vm2, %v5839_v34, 0.0  ;;  %v1402_v22 = vmax.f32 %v1400_v25, %v1401_v16  ;;  %v1427_v14 = vmax.f32 %v1425_v57, %v1426_v4  ;;  %v5849_v35 = vpop.eup %5205  ;;  %v1468_v17 = vmul.f32 1.442695, %v1442_v63 }
 0x241   : > { %v1482_v1 = vadd.f32 %v1481_v7, %v1480_v12  ;;  %v1470_v11 = vmul.f32 1.442695, %v1443_v43  ;;  %v1418_v38 = vmax.f32 %v1416_v28, %v1417_v9  ;;  %v5851_v52 = vpop.eup %5207  ;;  %v1497_v36 = vadd.f32 %v1496_v30, %v1495_v21 }
 0x242   : > { %v1507_v55 = vsel %vm1359_vm2, %v5849_v35, 0.0  ;;  %v1403_v56 = vrot.slane %v1402_v22, 1  ;;  %v1428_v60 = vrot.slane %v1427_v14, 2  ;;  %v5855_v2 = vpop.eup %5209  ;;  %v5859_v46 = vmul.f32 %v5851_v52, %v5771_v54 }
 0x243   : > { %v1483_v13 = vrot.slane %v1482_v1, 4  ;;  %5215 = vpow2.f32 %v1468_v17  ;;  %v1419_v39 = vrot.slane %v1418_v38, 2  ;;  %v1508_v59 = vsel %vm1359_vm2, %v5855_v2, 0.0 }
 0x244   : > { %5217 = vrcp.f32 %v1497_v36  ;;  %v1404_v53 = vmax.f32 %v1402_v22, %v1403_v56  ;;  %v1429_v25 = vmax.f32 %v1427_v14, %v1428_v60  ;;  %v1509_v28 = vadd.f32 %v1508_v59, %v1507_v55 }
 0x245   : > { %v5863_v57 = vpop.eup %5211  ;;  %v1484_v49 = vadd.f32 %v1483_v13, %v1482_v1  ;;  %5219 = vpow2.f32 %v1470_v11  ;;  %v1420_v21 = vmax.f32 %v1418_v38, %v1419_v39  ;;  %v5874_v55 = vpack.c.bf16 %v5767_v58, %v1777_v15 }
 0x246   : > { %v5865_v12 = vpop.eup %5213  ;;  %v1498_v54 = vsel %vm1359_vm2, %v5863_v57, 0.0  ;;  %v1440_v16 = vsub.f32 %v5708_v48, %v1404_v53  ;;  %v1441_v4 = vsub.f32 %v5720_v29, %v1404_v53  ;;  %v1430_v63 = vrot.slane %v1429_v25, 1 }
 0x247   : > { %v1485_v43 = vrot.slane %v1484_v49, 2  ;;  %v1510_v9 = vrot.slane %v1509_v28, 4  ;;  %v1499_v30 = vsel %vm1359_vm2, %v5865_v12, 0.0  ;;  %v1421_v7 = vrot.slane %v1420_v21, 1 }
 0x248   : > { %v1500_v22 = vadd.f32 %v1499_v30, %v1498_v54  ;;  %v1464_v14 = vmul.f32 1.442695, %v1440_v16  ;;  %v1466_v1 = vmul.f32 1.442695, %v1441_v4  ;;  %v1431_v17 = vmax.f32 %v1429_v25, %v1430_v63 }
 0x249   : > { %v1486_v11 = vadd.f32 %v1485_v43, %v1484_v49  ;;  %v1511_v38 = vadd.f32 %v1510_v9, %v1509_v28  ;;  %v1422_v36 = vmax.f32 %v1420_v21, %v1421_v7 }
 0x24a   : > { %v1501_v48 = vrot.slane %v1500_v22, 4  ;;  %5221 = vpow2.f32 %v1464_v14  ;;  %v1446_v29 = vsub.f32 %v5735_v26, %v1431_v17  ;;  %v1447_v56 = vsub.f32 %v5743_v42, %v1431_v17 }
 0x24b   : > { %v1487_v60 = vrot.slane %v1486_v11, 1  ;;  %v1512_v13 = vrot.slane %v1511_v38, 2  ;;  %5223 = vpow2.f32 %v1466_v1  ;;  %v1444_v39 = vsub.f32 %v5737_v33, %v1422_v36 }
 0x24c   : > { %v1502_v59 = vadd.f32 %v1501_v48, %v1500_v22  ;;  %v1476_v53 = vmul.f32 1.442695, %v1446_v29  ;;  %v1478_v25 = vmul.f32 1.442695, %v1447_v56  ;;  %v1445_v49 = vsub.f32 %v5749_v32, %v1422_v36 }
 0x24d   : > { %v5880_v28 = vpop.eup %5215  ;;  %v1488_v58 = vadd.f32 %v1487_v60, %v1486_v11  ;;  %v1513_v15 = vadd.f32 %v1512_v13, %v1511_v38  ;;  %v1472_v21 = vmul.f32 1.442695, %v1444_v39  ;;  %v5884_v26 = vpack.c.bf16 %v5755_v61, %v5833_v50 }
 0x24e   : > { %v5218_v42 = vpop.eup %5217  ;;  %v1503_v54 = vrot.slane %v1502_v59, 2  ;;  %v1525_v16 = vsel %vm1359_vm2, %v5880_v28, 0.0  ;;  %5225 = vpow2.f32 %v1476_v53  ;;  %v1474_v33 = vmul.f32 1.442695, %v1445_v49 }
 0x24f   : > { %v5888_v4 = vpop.eup %5219  ;;  %v1557_v32 = vmul.f32 %v5218_v42, %v5805_v20  ;;  %5227 = vrcp.f32 %v1488_v58  ;;  %v1514_v63 = vrot.slane %v1513_v15, 1  ;;  %v1556_v43 = vmul.f32 %v5218_v42, %v5797_v24 }
 0x250   : > { %v1504_v9 = vadd.f32 %v1503_v54, %v1502_v59  ;;  %v1526_v61 = vsel %vm1359_vm2, %v5888_v4, 0.0  ;;  %5229 = vpow2.f32 %v1478_v25  ;;  %v1783_v50 = vmul.f32 %v5783_v3, %v5684_v51 }
 0x251   : > { %v1515_v30 = vadd.f32 %v1514_v63, %v1513_v15  ;;  %v1527_v7 = vadd.f32 %v1526_v61, %v1525_v16  ;;  %5231 = vpow2.f32 %v1472_v21  ;;  %v5896_v22 = vpack.c.bf16 %v1557_v32, %v1556_v43 }
 0x252   : > { %v1505_v14 = vrot.slane %v1504_v9, 1  ;;  %5233 = vpow2.f32 %v1474_v33  ;;  %v5899_v20 = vpack.c.bf16 %v5791_v5, %v1783_v50  ;;  %v1786_v24 = vmul.f32 %v5775_v44, %v5672_v45 }
 0x253   : > { %5235 = vrcp.f32 %v1515_v30  ;;  %v1528_v1 = vrot.slane %v1527_v7, 4  ;;  %4663 = vmatmul.mubr.msk.bf16.vlgmr.msra.gmra.mrb[56].mxu1 %vm1359_vm2, %v5896_v22  ;;  %v1792_v51 = vmul.f32 %v5801_v41, %v5702_v47  ;;  %v1798_v3 = vmul.f32 %v5835_v0, %v5739_v37 }
 0x254   : > { %v5909_v17 = vpop.eup %5221  ;;  %v1506_v11 = vadd.f32 %v1505_v14, %v1504_v9  ;;  %4673 = vmatpush3.bf16.msra.mxu1 %v5398_v27  ;;  %v6427_v5 = vmov 0.0   ;;  %v5915_v45 = vpack.c.bf16 %v5781_v19, %v1786_v24  ;;  %v1795_v44 = vmul.f32 %v5851_v52, %v5763_v40 }
 0x255   : > { %4674 = vmatprep.mubr.msk.bf16.mxu1 %vm5272_vm1, %v6427_v5  ;;  %v5919_v38 = vpop.eup %5223  ;;  %v1529_v47 = vadd.f32 %v1528_v1, %v1527_v7  ;;  %v1516_v37 = vsel %vm1359_vm2, %v5909_v17, 0.0  ;;  %4684 = vmatprep.subr.bf16.mxu1 %v6427_v5  ;;  %v5925_v41 = vpack.c.bf16 %v5809_v62, %v1792_v51  ;;  %v5928_v0 = vpack.c.bf16 %v5843_v8, %v1798_v3 }
 0x256   : > { %5237 = vrcp.f32 %v1506_v11  ;;  %v1517_v19 = vsel %vm1359_vm2, %v5919_v38, 0.0  ;;  %v5933_v40 = vpack.c.bf16 %v5859_v46, %v1795_v44 }
 0x257   : > { %v1530_v52 = vrot.slane %v1529_v47, 2  ;;  %v1518_v36 = vadd.f32 %v1517_v19, %v1516_v37 }
 0x258   : > { %v5935_v48 = vpop.eup %5225 }
 0x259   : > { %v5228_v29 = vpop.eup %5227  ;;  %v1531_v56 = vadd.f32 %v1530_v52, %v1529_v47  ;;  %v1519_v60 = vrot.slane %v1518_v36, 4  ;;  %v1543_v62 = vsel %vm1359_vm2, %v5935_v48, 0.0 }
 0x25a   : > { %v5939_v13 = vpop.eup %5229  ;;  %v1554_v8 = vmul.f32 %v5228_v29, %v5839_v34  ;;  %v1553_v39 = vmul.f32 %v5228_v29, %v5827_v18 }
 0x25b   : > { %v5943_v59 = vpop.eup %5231  ;;  %v1532_v46 = vrot.slane %v1531_v56, 1  ;;  %v1520_v53 = vadd.f32 %v1519_v60, %v1518_v36  ;;  %v1544_v25 = vsel %vm1359_vm2, %v5939_v13, 0.0  ;;  %v6428_v60 = vld [vmem:[#allocation5_spill] sm:$0xff] }
 0x25c   : > { %v5947_v49 = vpop.eup %5233  ;;  %v1545_v58 = vadd.f32 %v1544_v25, %v1543_v62  ;;  %v1534_v15 = vsel %vm1359_vm2, %v5943_v59, 0.0  ;;  %v5951_v21 = vpack.c.bf16 %v1554_v8, %v1553_v39 }
 0x25d   : > { %v5236_v42 = vpop.eup %5235  ;;  %v1533_v54 = vadd.f32 %v1532_v46, %v1531_v56  ;;  %v1521_v34 = vrot.slane %v1520_v53, 2  ;;  %v1535_v18 = vsel %vm1359_vm2, %v5947_v49, 0.0  ;;  %v6429_v46 = vld [vmem:[#allocation2_spill] sm:$0xff] }
 0x25e   : > { %v1563_v16 = vmul.f32 %v5236_v42, %v5855_v2  ;;  %v1546_v33 = vrot.slane %v1545_v58, 4  ;;  %v1536_v32 = vadd.f32 %v1535_v18, %v1534_v15  ;;  %4657 = vmatmul.mubr.msk.bf16.vlgmr.msra.gmra.mrb[40].mxu0 %vm1359_vm2, %v5951_v21  ;;  %v1562_v63 = vmul.f32 %v5236_v42, %v5849_v35  ;;  %v5247_v42 = vld [vmem:[%s5349_s19 + $0x10] sm:$0xff] }
 0x25f   : > { %5239 = vrcp.f32 %v1533_v54  ;;  %v1522_v43 = vadd.f32 %v1521_v34, %v1520_v53  ;;  %4667 = vmatpush3.bf16.msra.mxu0 %v5384_v23  ;;  %4668 = vmatprep.mubr.msk.bf16.mxu0 %vm5272_vm1, %v6427_v5  ;;  %v6023_v54 = vmul.f32 0.05, %v5247_v42 }
 0x260   : > { %v5238_v9 = vpop.eup %5237  ;;  %v1547_v61 = vadd.f32 %v1546_v33, %v1545_v58  ;;  %v1537_v50 = vrot.slane %v1536_v32, 4  ;;  %v5962_v30 = vpack.c.bf16 %v1563_v16, %v1562_v63  ;;  %4678 = vmatprep.subr.bf16.mxu0 %v6427_v5  ;;  %v5248_v16 = vld [vmem:[%s5349_s19 + $0x18] sm:$0xff] }
 0x261   : > { %v1560_v2 = vmul.f32 %v5238_v9, %v5865_v12  ;;  %v1523_v7 = vrot.slane %v1522_v43, 1  ;;  %v1559_v14 = vmul.f32 %v5238_v9, %v5863_v57  ;;  %v6027_v33 = vmul.f32 0.05, %v5248_v16  ;;  %v5254_v16 = vld [vmem:[%s5349_s19 + $0x28] sm:$0xff] }
 0x262   : > { %v1548_v35 = vrot.slane %v1547_v61, 2  ;;  %v1538_v24 = vadd.f32 %v1537_v50, %v1536_v32  ;;  %4675 = vmatmul.mubr.msk.bf16.vlgmr.msra.gmra.mrb[60].mxu1 %vm1359_vm2, %v5962_v30 }
 0x263   : > { %v1524_v1 = vadd.f32 %v1523_v7, %v1522_v43  ;;  %v5969_v51 = vpack.c.bf16 %v1560_v2, %v1559_v14  ;;  %4685 = vmatpush3.bf16.msra.mxu1 %v5359_v10  ;;  %4686 = vmatprep.mubr.msk.bf16.mxu1 %vm5272_vm1, %v6427_v5  ;;  %v5249_v7 = vld [vmem:[%s5349_s19] sm:$0xff] }
 0x264   : > { %v1549_v3 = vadd.f32 %v1548_v35, %v1547_v61  ;;  %v1539_v11 = vrot.slane %v1538_v24, 2  ;;  %4696 = vmatprep.subr.bf16.mxu1 %v6427_v5  ;;  %v6032_v14 = vmul.f32 0.05, %v5249_v7 }
 0x265   : > { %5241 = vrcp.f32 %v1524_v1  ;;  %v5250_v1 = vld [vmem:[%s5349_s19 + $0x8] sm:$0xff] }
 0x266   : > { %v1550_v12 = vrot.slane %v1549_v3, 1  ;;  %v1540_v57 = vadd.f32 %v1539_v11, %v1538_v24  ;;  %4669 = vmatmul.mubr.msk.bf16.vlgmr.msra.gmra.mrb[44].mxu0 %vm1359_vm2, %v5969_v51 }
 0x267   : > { %4679 = vmatpush3.bf16.msra.mxu0 %v5354_v6  ;;  %4680 = vmatprep.mubr.msk.bf16.mxu0 %vm5272_vm1, %v6427_v5 }
 0x268   : > { %v1551_v44 = vadd.f32 %v1550_v12, %v1549_v3  ;;  %v1541_v47 = vrot.slane %v1540_v57, 1  ;;  %4690 = vmatprep.subr.bf16.mxu0 %v6427_v5  ;;  %v6035_v3 = vmul.f32 0.05, %v5250_v1 }
 0x269   : > { %v5240_v37 = vpop.eup %5239 }
 0x26a   : > { %v1569_v19 = vmul.f32 %v5240_v37, %v5888_v4  ;;  %5243 = vrcp.f32 %v1551_v44  ;;  %v1542_v52 = vadd.f32 %v1541_v47, %v1540_v57  ;;  %v1568_v36 = vmul.f32 %v5240_v37, %v5880_v28  ;;  %v5251_v47 = vld [vmem:[%s5349_s19 + $0x30] sm:$0xff] }
 0x26b   : > { %v6038_v37 = vmul.f32 0.05, %v5251_v47 }
 0x26c   : > { %5245 = vrcp.f32 %v1542_v52  ;;  %v5983_v29 = vpack.c.bf16 %v1569_v19, %v1568_v36 }
 0x26e   : > { %4687 = vmatmul.mubr.msk.bf16.vlgmr.msra.gmra.mrb[64].mxu1 %vm1359_vm2, %v5983_v29 }
 0x26f   : > { %v5242_v56 = vpop.eup %5241  ;;  %4697 = vmatpush3.bf16.msra.mxu1 %v6428_v60  ;;  %4698 = vmatprep.mubr.msk.bf16.mxu1 %vm5272_vm1, %v6427_v5 }
 0x270   : > { %v1566_v62 = vmul.f32 %v5242_v56, %v5919_v38  ;;  %v1565_v4 = vmul.f32 %v5242_v56, %v5909_v17  ;;  %4738 = vmatprep.subr.bf16.mxu1 %v6427_v5 }
 0x272   : > { %v5993_v8 = vpack.c.bf16 %v1566_v62, %v1565_v4  ;;  %v5252_v62 = vld [vmem:[%s5349_s19 + $0x38] sm:$0xff] }
 0x273   : > { %v6043_v4 = vmul.f32 0.05, %v5252_v62 }
 0x274   : > { %v5244_v28 = vpop.eup %5243  ;;  %4681 = vmatmul.mubr.msk.bf16.vlgmr.msra.gmra.mrb[48].mxu0 %vm1359_vm2, %v5993_v8 }
 0x275   : > { %v1575_v39 = vmul.f32 %v5244_v28, %v5939_v13  ;;  %4691 = vmatpush3.bf16.msra.mxu0 %v6429_v46  ;;  %4692 = vmatprep.mubr.msk.bf16.mxu0 %vm5272_vm1, %v6427_v5  ;;  %v1574_v38 = vmul.f32 %v5244_v28, %v5935_v48  ;;  %v4272_v48 = vld [vmem:[%s6408_s5 + $0x4] sm:$0xf] }
 0x276   : > { %v5246_v53 = vpop.eup %5245  ;;  %5071 = vmatprep.subr.msk.bf16.mxu0 %vm375_vm0, %v4272_v48 }
 0x277   : > { %v1572_v17 = vmul.f32 %v5246_v53, %v5947_v49  ;;  %v6003_v25 = vpack.c.bf16 %v1575_v39, %v1574_v38  ;;  %v1571_v58 = vmul.f32 %v5246_v53, %v5943_v59  ;;  %v2246_v59 = vsel %vm375_vm0, %v4272_v48, 0  ;;  %v1810_v49 = vld [vmem:[%s6408_s5] sm:$0xf] }
 0x279   : > { %4699 = vmatmul.mubr.msk.bf16.vlgmr.msra.gmra.mrb[68].mxu1 %vm1359_vm2, %v6003_v25  ;;  %v6008_v13 = vpack.c.bf16 %v1572_v17, %v1571_v58  ;;  %v5253_v58 = vld [vmem:[%s5349_s19 + $0x20] sm:$0xff] }
 0x27a   : > { %4740 = vmatprep.mubr.msk.bf16.mxu1 %vm5272_vm1, %v6427_v5  ;;  %v6046_v48 = vmul.f32 0.05, %v5253_v58 }
 0x27c   : > { %4693 = vmatmul.mubr.msk.bf16.vlgmr.msra.gmra.mrb[52].mxu0 %vm1359_vm2, %v6008_v13 }
 0x27e   : > { %4703 = vmatpush3.bf16.xpose.msra.mxu0 %v2246_v59  ;;  %v2346_v59 = vsel %vm375_vm0, %v1810_v49, 0 }
 0x27f   : > { %5072 = vmatprep.subr.msk.bf16.mxu0 %vm375_vm0, %v1810_v49 }
 0x326   : > { %v1892_v15 = vpop.f32.mrb[56].mxu1 }
 0x327   : > { %v2181_v34 = vmul.f32 0.95, %v1892_v15  ;;  %v4664_v18 = vpop.f32.mrb[57].mxu1 }
 0x328   : > { %v1895_v32 = vpop.f32.mrb[58].mxu1 }
 0x329   : > { %v2182_v63 = vmul.f32 0.95, %v1895_v32  ;;  %v4665_v43 = vpop.f32.mrb[59].mxu1  ;;  %v2197_v9 = vadd.f32 %v2181_v34, %v6023_v54  ;;  %v6053_v32 = vmul.f32 0.05, %v5254_v16 }
 0x32b   : > { %v2198_v61 = vadd.f32 %v2182_v63, %v6027_v33 }
 0x32d   : > { %v2212_v50 = vpack.c.bf16 %v2198_v61, %v2197_v9 }
 0x331   : > { %v1848_v2 = vpop.f32.mrb[40].mxu0 }
 0x332   : > { %v2179_v35 = vmul.f32 0.95, %v1848_v2  ;;  %v4658_v24 = vpop.f32.mrb[41].mxu0 }
 0x333   : > { %v1851_v11 = vpop.f32.mrb[42].mxu0  ;;  %v5255_v24 = vld [vmem:[%s5349_s19 + $0x50] sm:$0xff] }
 0x334   : > { %v2180_v12 = vmul.f32 0.95, %v1851_v11  ;;  %v4659_v57 = vpop.f32.mrb[43].mxu0  ;;  %v2195_v19 = vadd.f32 %v2179_v35, %v6032_v14  ;;  %v6065_v1 = vmul.f32 0.05, %v5255_v24  ;;  %v5261_v24 = vld [vmem:[%s5349_s19 + $0x60] sm:$0xff] }
 0x335   : > { %v1980_v44 = vpop.f32.mrb[60].mxu1  ;;  %v5256_v57 = vld [vmem:[%s5349_s19 + $0x58] sm:$0xff] }
 0x336   : > { %v2196_v52 = vadd.f32 %v2180_v12, %v6035_v3  ;;  %v2185_v36 = vmul.f32 0.95, %v1980_v44  ;;  %v4676_v56 = vpop.f32.mrb[61].mxu1 }
 0x337   : > { %v1983_v28 = vpop.f32.mrb[62].mxu1  ;;  %v5257_v56 = vld [vmem:[%s5349_s19 + $0x40] sm:$0xff] }
 0x338   : > { %v2211_v39 = vpack.c.bf16 %v2196_v52, %v2195_v19  ;;  %v2186_v38 = vmul.f32 0.95, %v1983_v28  ;;  %v4677_v53 = vpop.f32.mrb[63].mxu1  ;;  %v2201_v15 = vadd.f32 %v2185_v36, %v6038_v37  ;;  %v6079_v62 = vmul.f32 0.05, %v5257_v56 }
 0x339   : > { %v1936_v17 = vpop.f32.mrb[44].mxu0 }
 0x33a   : > { %v2183_v42 = vmul.f32 0.95, %v1936_v17  ;;  %v4670_v34 = vpop.f32.mrb[45].mxu0  ;;  %v2202_v18 = vadd.f32 %v2186_v38, %v6043_v4  ;;  %4704 = vmatprep.mubr.msk.bf16.mxu0 %vm375_vm0, %v2211_v39  ;;  %4739 = vmatpush3.bf16.msra.mxu1 %v2211_v39 }
 0x33b   : > { %v1939_v63 = vpop.f32.mrb[46].mxu0  ;;  %4705 = vmatmul.mubr.msk.bf16.vlgmr.msra.gmra.mrb[56].mxu0 %vm375_vm0, %v2212_v50  ;;  %4744 = vmatprep.subr.bf16.mxu1 %v6427_v5 }
 0x33c   : > { %v2214_v43 = vpack.c.bf16 %v2202_v18, %v2201_v15  ;;  %v2184_v49 = vmul.f32 0.95, %v1939_v63  ;;  %v4671_v9 = vpop.f32.mrb[47].mxu0  ;;  %4721 = vmatpush3.bf16.xpose.msra.mxu0 %v2346_v59  ;;  %v2199_v61 = vadd.f32 %v2183_v42, %v6046_v48  ;;  %v5259_v18 = vld [vmem:[%s5349_s19 + $0x70] sm:$0xff] }
 0x33d   : > { %4741 = vmatmul.mubr.msk.bf16.vlgmr.msra.gmra.mrb[72].mxu1 %vm1359_vm2, %v5951_v21  ;;  %v6068_v21 = vmul.f32 0.05, %v5256_v57  ;;  %v6088_v16 = vmul.f32 0.05, %v5259_v18  ;;  %v5260_v9 = vld [vmem:[%s5349_s19 + $0x78] sm:$0xff] }
 0x33e   : > { %v2200_v2 = vadd.f32 %v2184_v49, %v6053_v32  ;;  %4745 = vmatpush3.bf16.msra.mxu1 %v2212_v50  ;;  %4746 = vmatprep.mubr.msk.bf16.mxu1 %vm5272_vm1, %v6427_v5 }
 0x33f   : > { %4750 = vmatprep.subr.bf16.mxu1 %v6427_v5 }
 0x340   : > { %v2213_v7 = vpack.c.bf16 %v2200_v2, %v2199_v61  ;;  %v6091_v61 = vmul.f32 0.05, %v5260_v9 }
 0x341   : > { %v2068_v35 = vpop.f32.mrb[64].mxu1 }
 0x342   : > { %v2189_v11 = vmul.f32 0.95, %v2068_v35  ;;  %v4688_v12 = vpop.f32.mrb[65].mxu1  ;;  %4708 = vmatprep.mubr.msk.bf16.mxu0 %vm375_vm0, %v2213_v7 }
 0x343   : > { %v2071_v44 = vpop.f32.mrb[66].mxu1  ;;  %4709 = vmatmul.mubr.msk.bf16.gmra.mrb[60].mxu0 %vm375_vm0, %v2214_v43 }
 0x344   : > { %v2190_v50 = vmul.f32 0.95, %v2071_v44  ;;  %v4689_v47 = vpop.f32.mrb[67].mxu1  ;;  %v2205_v19 = vadd.f32 %v2189_v11, %v6065_v1  ;;  %v6098_v11 = vmul.f32 0.05, %v5261_v24 }
 0x345   : > { %4747 = vmatmul.mubr.msk.bf16.vlgmr.msra.gmra.mrb[76].mxu1 %vm1359_vm2, %v5896_v22  ;;  %v5258_v22 = vld [vmem:[%s5349_s19 + $0x48] sm:$0xff] }
 0x346   : > { %v2206_v52 = vadd.f32 %v2190_v50, %v6068_v21  ;;  %4751 = vmatpush3.bf16.msra.mxu1 %v2213_v7  ;;  %4752 = vmatprep.mubr.msk.bf16.mxu1 %vm5272_vm1, %v6427_v5  ;;  %v6083_v53 = vmul.f32 0.05, %v5258_v22  ;;  %v5262_v47 = vld [vmem:[%s5349_s19 + $0x68] sm:$0xff] }
 0x347   : > { %v2024_v36 = vpop.f32.mrb[48].mxu0  ;;  %4756 = vmatprep.subr.bf16.mxu1 %v6427_v5 }
 0x348   : > { %v2187_v28 = vmul.f32 0.95, %v2024_v36  ;;  %v4682_v39 = vpop.f32.mrb[49].mxu0  ;;  %v2216_v38 = vpack.c.bf16 %v2206_v52, %v2205_v19 }
 0x349   : > { %v2027_v17 = vpop.f32.mrb[50].mxu0 }
 0x34a   : > { %v2188_v58 = vmul.f32 0.95, %v2027_v17  ;;  %v4683_v59 = vpop.f32.mrb[51].mxu0  ;;  %v2203_v15 = vadd.f32 %v2187_v28, %v6079_v62 }
 0x34c   : > { %v2204_v42 = vadd.f32 %v2188_v58, %v6083_v53  ;;  %v2156_v34 = vpop.f32.mrb[68].mxu1  ;;  %v6430_v58 = vld [vmem:[#allocation3_spill] sm:$0xff] }
 0x34d   : > { %v2193_v63 = vmul.f32 0.95, %v2156_v34  ;;  %v4700_v49 = vpop.f32.mrb[69].mxu1  ;;  %4753 = vmatmul.mubr.msk.bf16.vlgmr.msra.gmra.mrb[80].mxu1 %vm1359_vm2, %v5969_v51  ;;  %v6103_v51 = vmul.f32 0.05, %v5262_v47 }
 0x34e   : > { %v2215_v2 = vpack.c.bf16 %v2204_v42, %v2203_v15  ;;  %v2159_v7 = vpop.f32.mrb[70].mxu1  ;;  %4757 = vmatpush3.bf16.msra.mxu1 %v2214_v43  ;;  %4758 = vmatprep.mubr.msk.bf16.mxu1 %vm5272_vm1, %v6427_v5 }
 0x34f   : > { %v2112_v35 = vpop.f32.mrb[52].mxu0  ;;  %v2194_v12 = vmul.f32 0.95, %v2159_v7  ;;  %v4701_v57 = vpop.f32.mrb[71].mxu1  ;;  %4762 = vmatprep.subr.bf16.mxu1 %v6427_v5  ;;  %v2209_v43 = vadd.f32 %v2193_v63, %v6088_v16 }
 0x350   : > { %v2191_v44 = vmul.f32 0.95, %v2112_v35  ;;  %v4694_v50 = vpop.f32.mrb[53].mxu0  ;;  %4712 = vmatprep.mubr.msk.bf16.mxu0 %vm375_vm0, %v2215_v2 }
 0x351   : > { %v2210_v19 = vadd.f32 %v2194_v12, %v6091_v61  ;;  %v2115_v52 = vpop.f32.mrb[54].mxu0  ;;  %4713 = vmatmul.mubr.msk.bf16.gmra.mrb[64].mxu0 %vm375_vm0, %v2216_v38 }
 0x352   : > { %v2192_v36 = vmul.f32 0.95, %v2115_v52  ;;  %v4695_v56 = vpop.f32.mrb[55].mxu0  ;;  %v2207_v39 = vadd.f32 %v2191_v44, %v6098_v11 }
 0x353   : > { %v2218_v28 = vpack.c.bf16 %v2210_v19, %v2209_v43 }
 0x354   : > { %v2208_v22 = vadd.f32 %v2192_v36, %v6103_v51 }
 0x355   : > { %4759 = vmatmul.mubr.msk.bf16.vlgmr.msra.gmra.mrb[84].mxu1 %vm1359_vm2, %v5962_v30  ;;  %v6431_v30 = vld [vmem:[#allocation4_spill] sm:$0xff] }
 0x356   : > { %v2217_v17 = vpack.c.bf16 %v2208_v22, %v2207_v39  ;;  %4763 = vmatpush3.bf16.msra.mxu1 %v2215_v2  ;;  %4764 = vmatprep.mubr.msk.bf16.mxu1 %vm5272_vm1, %v6427_v5 }
 0x357   : > { %4768 = vmatprep.subr.bf16.mxu1 %v6427_v5 }
 0x358   : > { %4716 = vmatprep.mubr.msk.bf16.mxu0 %vm375_vm0, %v2217_v17 }
 0x359   : > { %4717 = vmatmul.mubr.msk.bf16.gmra.mrb[68].mxu0 %vm375_vm0, %v2218_v28 }
 0x35a   : > { %4722 = vmatprep.mubr.msk.bf16.mxu0 %vm375_vm0, %v6430_v58 }
 0x35d   : > { %4765 = vmatmul.mubr.msk.bf16.vlgmr.msra.gmra.mrb[88].mxu1 %vm1359_vm2, %v5993_v8 }
 0x35e   : > { %4769 = vmatpush3.bf16.msra.mxu1 %v2216_v38  ;;  %4770 = vmatprep.mubr.msk.bf16.mxu1 %vm5272_vm1, %v6427_v5 }
 0x35f   : > { %4774 = vmatprep.subr.bf16.mxu1 %v6427_v5 }
 0x361   : > { %4723 = vmatmul.mubr.msk.bf16.vlgmr.msra.gmra.mrb[56].mxu0 %vm375_vm0, %v6431_v30 }
 0x362   : > { %4726 = vmatprep.mubr.msk.bf16.mxu0 %vm375_vm0, %v5384_v23 }
 0x365   : > { %4771 = vmatmul.mubr.msk.bf16.vlgmr.msra.gmra.mrb[92].mxu1 %vm1359_vm2, %v5983_v29  ;;  %v4297_v29 = vld [vmem:[%s6408_s5 + $0x8] sm:$0xf] }
 0x366   : > { %4775 = vmatpush3.bf16.msra.mxu1 %v2217_v17  ;;  %4776 = vmatprep.mubr.msk.bf16.mxu1 %vm5272_vm1, %v6427_v5  ;;  %v2840_v8 = vsel %vm375_vm0, %v4297_v29, 0 }
 0x367   : > { %4780 = vmatprep.subr.bf16.mxu1 %v6427_v5  ;;  %5073 = vmatprep.subr.msk.bf16.mxu0 %vm375_vm0, %v4297_v29 }
 0x368   : > { %4787 = vmatpush3.bf16.xpose.msra.mxu0 %v2840_v8 }
 0x369   : > { %4727 = vmatmul.mubr.msk.bf16.gmra.mrb[60].mxu0 %vm375_vm0, %v5398_v27  ;;  %4828 = vmatprep.subr.bf16.mxu0 %v6427_v5 }
 0x36a   : > { %4730 = vmatprep.mubr.msk.bf16.mxu0 %vm375_vm0, %v5354_v6 }
 0x36d   : > { %4777 = vmatmul.mubr.msk.bf16.vlgmr.msra.gmra.mrb[96].mxu1 %vm1359_vm2, %v6008_v13 }
 0x36e   : > { %4781 = vmatpush3.bf16.msra.mxu1 %v2218_v28  ;;  %4782 = vmatprep.mubr.msk.bf16.mxu1 %vm5272_vm1, %v6427_v5 }
 0x36f   : > { %4804 = vmatprep.subr.bf16.mxu1 %v6427_v5 }
 0x371   : > { %4731 = vmatmul.mubr.msk.bf16.gmra.mrb[64].mxu0 %vm375_vm0, %v5359_v10 }
 0x372   : > { %4734 = vmatprep.mubr.msk.bf16.mxu0 %vm375_vm0, %v6429_v46 }
 0x375   : > { %4783 = vmatmul.mubr.msk.bf16.vlgmr.msra.gmra.mrb[100].mxu1 %vm1359_vm2, %v6003_v25 }
 0x376   : > { %4805 = vmatpush3.bf16.msra.mxu1 %v6430_v58  ;;  %4806 = vmatprep.mubr.msk.bf16.mxu1 %vm5272_vm1, %v6427_v5 }
 0x377   : > { %4810 = vmatprep.subr.bf16.mxu1 %v6427_v5 }
 0x379   : > { %4735 = vmatmul.mubr.msk.bf16.gmra.mrb[68].mxu0 %vm375_vm0, %v6428_v60 }
 0x37d   : > { %4807 = vmatmul.mubr.msk.bf16.vlgmr.msra.gmra.mrb[104].mxu1 %vm1359_vm2, %v5874_v55 }
 0x37e   : > { %4811 = vmatpush3.bf16.msra.mxu1 %v6431_v30  ;;  %4812 = vmatprep.mubr.msk.bf16.mxu1 %vm5272_vm1, %v6427_v5 }
 0x37f   : > { %4816 = vmatprep.subr.bf16.mxu1 %v6427_v5 }
 0x385   : > { %4813 = vmatmul.mubr.msk.bf16.vlgmr.msra.gmra.mrb[108].mxu1 %vm1359_vm2, %v5884_v26 }
 0x386   : > { %4817 = vmatpush3.bf16.msra.mxu1 %v5384_v23  ;;  %4818 = vmatprep.mubr.msk.bf16.mxu1 %vm5272_vm1, %v6427_v5 }
 0x387   : > { %4822 = vmatprep.subr.bf16.mxu1 %v6427_v5 }
 0x38d   : > { %4819 = vmatmul.mubr.msk.bf16.vlgmr.msra.gmra.mrb[112].mxu1 %vm1359_vm2, %v5899_v20 }
 0x38e   : > { %4823 = vmatpush3.bf16.msra.mxu1 %v5398_v27  ;;  %4824 = vmatprep.mubr.msk.bf16.mxu1 %vm5272_vm1, %v6427_v5 }
 0x38f   : > { %4834 = vmatprep.subr.bf16.mxu1 %v6427_v5 }
 0x395   : > { %4825 = vmatmul.mubr.msk.bf16.vlgmr.msra.gmra.mrb[116].mxu1 %vm1359_vm2, %v5915_v45 }
 0x396   : > { %4835 = vmatpush3.bf16.msra.mxu1 %v5359_v10  ;;  %4836 = vmatprep.mubr.msk.bf16.mxu1 %vm5272_vm1, %v6427_v5 }
 0x397   : > { %4846 = vmatprep.subr.bf16.mxu1 %v6427_v5 }
 0x39d   : > { %4837 = vmatmul.mubr.msk.bf16.vlgmr.msra.gmra.mrb[120].mxu1 %vm1359_vm2, %v5925_v41 }
 0x39e   : > { %4847 = vmatpush3.bf16.msra.mxu1 %v6428_v60  ;;  %4848 = vmatprep.mubr.msk.bf16.mxu1 %vm5272_vm1, %v6427_v5 }
 0x39f   : > { %4888 = vmatprep.subr.bf16.mxu1 %v6427_v5 }
 0x3a5   : > { %4849 = vmatmul.mubr.msk.bf16.vlgmr.msra.gmra.mrb[124].mxu1 %vm1359_vm2, %v5928_v0 }
 0x3a6   : > { %4890 = vmatprep.mubr.msk.bf16.mxu1 %vm5272_vm1, %v6427_v5 }
 0x410   : > { %v2479_v25 = vpop.f32.mrb[72].mxu1 }
 0x411   : > { %v2773_v13 = vmul.f32 0.95, %v2479_v25  ;;  %v4742_v38 = vpop.f32.mrb[73].mxu1 }
 0x412   : > { %v2482_v59 = vpop.f32.mrb[74].mxu1 }
 0x413   : > { %v2774_v15 = vmul.f32 0.95, %v2482_v59  ;;  %v4743_v42 = vpop.f32.mrb[75].mxu1  ;;  %v2789_v34 = vadd.f32 %v2773_v13, %v6032_v14 }
 0x415   : > { %v2790_v18 = vadd.f32 %v2774_v15, %v6035_v3 }
 0x417   : > { %v2805_v63 = vpack.c.bf16 %v2790_v18, %v2789_v34 }
 0x418   : > { %v2520_v49 = vpop.f32.mrb[76].mxu1 }
 0x419   : > { %v2775_v9 = vmul.f32 0.95, %v2520_v49  ;;  %v4748_v2 = vpop.f32.mrb[77].mxu1  ;;  %4788 = vmatprep.mubr.msk.bf16.mxu0 %vm375_vm0, %v2805_v63 }
 0x41a   : > { %v2523_v7 = vpop.f32.mrb[78].mxu1 }
 0x41b   : > { %v2776_v35 = vmul.f32 0.95, %v2523_v7  ;;  %v4749_v24 = vpop.f32.mrb[79].mxu1  ;;  %v2791_v12 = vadd.f32 %v2775_v9, %v6023_v54 }
 0x41d   : > { %v2792_v57 = vadd.f32 %v2776_v35, %v6027_v33 }
 0x41f   : > { %v2806_v44 = vpack.c.bf16 %v2792_v57, %v2791_v12 }
 0x420   : > { %v2561_v50 = vpop.f32.mrb[80].mxu1 }
 0x421   : > { %v2777_v47 = vmul.f32 0.95, %v2561_v50  ;;  %v4754_v43 = vpop.f32.mrb[81].mxu1  ;;  %4789 = vmatmul.mubr.msk.bf16.vlgmr.msra.gmra.mrb[56].mxu0 %vm375_vm0, %v2806_v44 }
 0x422   : > { %v2564_v19 = vpop.f32.mrb[82].mxu1  ;;  %4829 = vmatpush3.bf16.msra.mxu0 %v5354_v6 }
 0x423   : > { %v2778_v52 = vmul.f32 0.95, %v2564_v19  ;;  %v4755_v36 = vpop.f32.mrb[83].mxu1  ;;  %4840 = vmatprep.subr.bf16.mxu0 %v6427_v5  ;;  %v2793_v56 = vadd.f32 %v2777_v47, %v6046_v48 }
 0x425   : > { %v2794_v28 = vadd.f32 %v2778_v52, %v6053_v32 }
 0x427   : > { %v2807_v39 = vpack.c.bf16 %v2794_v28, %v2793_v56 }
 0x428   : > { %v2602_v22 = vpop.f32.mrb[84].mxu1 }
 0x429   : > { %v2779_v17 = vmul.f32 0.95, %v2602_v22  ;;  %v4760_v29 = vpop.f32.mrb[85].mxu1  ;;  %4792 = vmatprep.mubr.msk.bf16.mxu0 %vm375_vm0, %v2807_v39 }
 0x42a   : > { %v2605_v8 = vpop.f32.mrb[86].mxu1 }
 0x42b   : > { %v2780_v25 = vmul.f32 0.95, %v2605_v8  ;;  %v4761_v13 = vpop.f32.mrb[87].mxu1  ;;  %v2795_v38 = vadd.f32 %v2779_v17, %v6038_v37 }
 0x42d   : > { %v2796_v59 = vadd.f32 %v2780_v25, %v6043_v4 }
 0x42f   : > { %v2808_v15 = vpack.c.bf16 %v2796_v59, %v2795_v38 }
 0x430   : > { %v2643_v42 = vpop.f32.mrb[88].mxu1 }
 0x431   : > { %v2781_v34 = vmul.f32 0.95, %v2643_v42  ;;  %v4766_v18 = vpop.f32.mrb[89].mxu1  ;;  %4793 = vmatmul.mubr.msk.bf16.gmra.mrb[60].mxu0 %vm375_vm0, %v2808_v15 }
 0x432   : > { %v2646_v63 = vpop.f32.mrb[90].mxu1 }
 0x433   : > { %v2782_v49 = vmul.f32 0.95, %v2646_v63  ;;  %v4767_v9 = vpop.f32.mrb[91].mxu1  ;;  %v2797_v2 = vadd.f32 %v2781_v34, %v6079_v62 }
 0x435   : > { %v2798_v7 = vadd.f32 %v2782_v49, %v6083_v53 }
 0x437   : > { %v2809_v35 = vpack.c.bf16 %v2798_v7, %v2797_v2 }
 0x438   : > { %v2684_v24 = vpop.f32.mrb[92].mxu1 }
 0x439   : > { %v2783_v12 = vmul.f32 0.95, %v2684_v24  ;;  %v4772_v57 = vpop.f32.mrb[93].mxu1  ;;  %4796 = vmatprep.mubr.msk.bf16.mxu0 %vm375_vm0, %v2809_v35 }
 0x43a   : > { %v2687_v44 = vpop.f32.mrb[94].mxu1 }
 0x43b   : > { %v2784_v50 = vmul.f32 0.95, %v2687_v44  ;;  %v4773_v47 = vpop.f32.mrb[95].mxu1  ;;  %v2799_v43 = vadd.f32 %v2783_v12, %v6065_v1 }
 0x43d   : > { %v2800_v19 = vadd.f32 %v2784_v50, %v6068_v21 }
 0x43f   : > { %v2810_v52 = vpack.c.bf16 %v2800_v19, %v2799_v43  ;;  %v4315_v43 = vld [vmem:[%s6410_s7 + $0x4] sm:$0xf] }
 0x440   : > { %v2725_v36 = vpop.f32.mrb[96].mxu1 }
 0x441   : > { %v2785_v56 = vmul.f32 0.95, %v2725_v36  ;;  %v4778_v28 = vpop.f32.mrb[97].mxu1  ;;  %4797 = vmatmul.mubr.msk.bf16.gmra.mrb[64].mxu0 %vm375_vm0, %v2810_v52 }
 0x442   : > { %v2728_v39 = vpop.f32.mrb[98].mxu1 }
 0x443   : > { %v2786_v22 = vmul.f32 0.95, %v2728_v39  ;;  %v4779_v17 = vpop.f32.mrb[99].mxu1  ;;  %v2801_v29 = vadd.f32 %v2785_v56, %v6098_v11 }
 0x445   : > { %v2802_v8 = vadd.f32 %v2786_v22, %v6103_v51 }
 0x447   : > { %v2811_v25 = vpack.c.bf16 %v2802_v8, %v2801_v29  ;;  %v3397_v8 = vsel %vm375_vm0, %v4315_v43, 0 }
 0x448   : > { %v2766_v13 = vpop.f32.mrb[100].mxu1 }
 0x449   : > { %v2787_v38 = vmul.f32 0.95, %v2766_v13  ;;  %v4784_v59 = vpop.f32.mrb[101].mxu1  ;;  %4800 = vmatprep.mubr.msk.bf16.mxu0 %vm375_vm0, %v2811_v25 }
 0x44a   : > { %v2769_v15 = vpop.f32.mrb[102].mxu1 }
 0x44b   : > { %v2788_v42 = vmul.f32 0.95, %v2769_v15  ;;  %v4785_v34 = vpop.f32.mrb[103].mxu1  ;;  %v2803_v18 = vadd.f32 %v2787_v38, %v6088_v16 }
 0x44d   : > { %v2804_v63 = vadd.f32 %v2788_v42, %v6091_v61 }
 0x44f   : > { %v2812_v49 = vpack.c.bf16 %v2804_v63, %v2803_v18 }
 0x450   : > { %v3015_v9 = vpop.f32.mrb[104].mxu1 }
 0x451   : > { %v3330_v2 = vmul.f32 0.95, %v3015_v9  ;;  %4801 = vmatmul.mubr.msk.bf16.gmra.mrb[68].mxu0 %vm375_vm0, %v2812_v49  ;;  %v4808_v7 = vpop.f32.mrb[105].mxu1 }
 0x452   : > { %v3018_v35 = vpop.f32.mrb[106].mxu1  ;;  %4830 = vmatprep.mubr.msk.bf16.mxu0 %vm5272_vm1, %v6427_v5 }
 0x453   : > { %v3331_v24 = vmul.f32 0.95, %v3018_v35  ;;  %v4809_v12 = vpop.f32.mrb[107].mxu1  ;;  %v3346_v57 = vadd.f32 %v3330_v2, %v6032_v14 }
 0x455   : > { %v3347_v44 = vadd.f32 %v3331_v24, %v6035_v3 }
 0x457   : > { %v3362_v50 = vpack.c.bf16 %v3347_v44, %v3346_v57 }
 0x458   : > { %v3059_v47 = vpop.f32.mrb[108].mxu1 }
 0x459   : > { %v3332_v19 = vmul.f32 0.95, %v3059_v47  ;;  %v4814_v52 = vpop.f32.mrb[109].mxu1  ;;  %4831 = vmatmul.mubr.msk.bf16.vlgmr.msra.gmra.mrb[72].mxu0 %vm1359_vm2, %v5817_v31  ;;  %4889 = vmatpush3.bf16.msra.mxu1 %v3362_v50 }
 0x45a   : > { %4841 = vmatpush3.bf16.msra.mxu0 %v6429_v46  ;;  %v3062_v36 = vpop.f32.mrb[110].mxu1  ;;  %4842 = vmatprep.mubr.msk.bf16.mxu0 %vm5272_vm1, %v6427_v5 }
 0x45b   : > { %v3333_v56 = vmul.f32 0.95, %v3062_v36  ;;  %v4815_v28 = vpop.f32.mrb[111].mxu1  ;;  %4894 = vmatprep.subr.bf16.mxu1 %v6427_v5  ;;  %5074 = vmatprep.subr.msk.bf16.mxu0 %vm375_vm0, %v4315_v43  ;;  %v3348_v39 = vadd.f32 %v3332_v19, %v6023_v54 }
 0x45c   : > { %4891 = vmatmul.mubr.msk.bf16.vlgmr.msra.gmra.mrb[128].mxu1 %vm1359_vm2, %v5874_v55 }
 0x45d   : > { %v3349_v22 = vadd.f32 %v3333_v56, %v6027_v33  ;;  %4896 = vmatprep.mubr.msk.bf16.mxu1 %vm5272_vm1, %v6427_v5 }
 0x45f   : > { %v3363_v17 = vpack.c.bf16 %v3349_v22, %v3348_v39 }
 0x460   : > { %v3103_v29 = vpop.f32.mrb[112].mxu1 }
 0x461   : > { %v3334_v25 = vmul.f32 0.95, %v3103_v29  ;;  %v4820_v13 = vpop.f32.mrb[113].mxu1  ;;  %4843 = vmatmul.mubr.msk.bf16.vlgmr.msra.gmra.mrb[76].mxu0 %vm1359_vm2, %v5933_v40  ;;  %4895 = vmatpush3.bf16.msra.mxu1 %v3363_v17 }
 0x462   : > { %v3106_v38 = vpop.f32.mrb[114].mxu1  ;;  %4854 = vmatprep.mubr.msk.bf16.mxu0 %vm375_vm0, %v3362_v50  ;;  %4900 = vmatprep.subr.bf16.mxu1 %v6427_v5 }
 0x463   : > { %v3335_v55 = vmul.f32 0.95, %v3106_v38  ;;  %4853 = vmatpush3.bf16.xpose.msra.mxu0 %v3397_v8  ;;  %v4821_v59 = vpop.f32.mrb[115].mxu1  ;;  %v3350_v15 = vadd.f32 %v3334_v25, %v6046_v48  ;;  %v4340_v38 = vld [vmem:[%s6410_s7 + $0x8] sm:$0xf] }
 0x464   : > { %4897 = vmatmul.mubr.msk.bf16.vlgmr.msra.gmra.mrb[132].mxu1 %vm1359_vm2, %v5884_v26 }
 0x465   : > { %v3351_v42 = vadd.f32 %v3335_v55, %v6053_v32  ;;  %4902 = vmatprep.mubr.msk.bf16.mxu1 %vm5272_vm1, %v6427_v5 }
 0x467   : > { %v3364_v34 = vpack.c.bf16 %v3351_v42, %v3350_v15 }
 0x468   : > { %v3147_v18 = vpop.f32.mrb[116].mxu1 }
 0x469   : > { %v3336_v63 = vmul.f32 0.95, %v3147_v18  ;;  %v4826_v49 = vpop.f32.mrb[117].mxu1  ;;  %4901 = vmatpush3.bf16.msra.mxu1 %v3364_v34 }
 0x46a   : > { %4855 = vmatmul.mubr.msk.bf16.vlgmr.msra.gmra.mrb[56].mxu0 %vm375_vm0, %v3363_v17  ;;  %v3150_v9 = vpop.f32.mrb[118].mxu1  ;;  %4906 = vmatprep.subr.bf16.mxu1 %v6427_v5 }
 0x46b   : > { %v3337_v2 = vmul.f32 0.95, %v3150_v9  ;;  %4858 = vmatprep.mubr.msk.bf16.mxu0 %vm375_vm0, %v3364_v34  ;;  %v4827_v26 = vpop.f32.mrb[119].mxu1  ;;  %v3352_v7 = vadd.f32 %v3336_v63, %v6038_v37 }
 0x46c   : > { %4903 = vmatmul.mubr.msk.bf16.vlgmr.msra.gmra.mrb[136].mxu1 %vm1359_vm2, %v5899_v20 }
 0x46d   : > { %v3353_v35 = vadd.f32 %v3337_v2, %v6043_v4  ;;  %4908 = vmatprep.mubr.msk.bf16.mxu1 %vm5272_vm1, %v6427_v5 }
 0x46f   : > { %v3365_v24 = vpack.c.bf16 %v3353_v35, %v3352_v7 }
 0x470   : > { %v3235_v12 = vpop.f32.mrb[120].mxu1 }
 0x471   : > { %v3340_v57 = vmul.f32 0.95, %v3235_v12  ;;  %v4838_v44 = vpop.f32.mrb[121].mxu1  ;;  %4907 = vmatpush3.bf16.msra.mxu1 %v3365_v24 }
 0x472   : > { %4859 = vmatmul.mubr.msk.bf16.gmra.mrb[60].mxu0 %vm375_vm0, %v3365_v24  ;;  %v3238_v50 = vpop.f32.mrb[122].mxu1  ;;  %4912 = vmatprep.subr.bf16.mxu1 %v6427_v5 }
 0x473   : > { %v3341_v47 = vmul.f32 0.95, %v3238_v50  ;;  %v4839_v43 = vpop.f32.mrb[123].mxu1  ;;  %v3356_v20 = vadd.f32 %v3340_v57, %v6065_v1 }
 0x474   : > { %4909 = vmatmul.mubr.msk.bf16.vlgmr.msra.gmra.mrb[140].mxu1 %vm1359_vm2, %v5915_v45  ;;  %v2977_v45 = vld [vmem:[%s6410_s7] sm:$0xf] }
 0x475   : > { %v3357_v19 = vadd.f32 %v3341_v47, %v6068_v21  ;;  %4914 = vmatprep.mubr.msk.bf16.mxu1 %vm5272_vm1, %v6427_v5  ;;  %5075 = vmatprep.subr.msk.bf16.mxu0 %vm375_vm0, %v2977_v45  ;;  %v3497_v13 = vsel %vm375_vm0, %v2977_v45, 0 }
 0x476   : > { %4871 = vmatpush3.bf16.xpose.msra.mxu0 %v3497_v13 }
 0x477   : > { %v3367_v52 = vpack.c.bf16 %v3357_v19, %v3356_v20  ;;  %5076 = vmatprep.subr.msk.bf16.mxu0 %vm375_vm0, %v4340_v38 }
 0x478   : > { %v3323_v36 = vpop.f32.mrb[124].mxu1 }
 0x479   : > { %v3344_v56 = vmul.f32 0.95, %v3323_v36  ;;  %v4850_v28 = vpop.f32.mrb[125].mxu1 }
 0x47a   : > { %v3326_v39 = vpop.f32.mrb[126].mxu1 }
 0x47b   : > { %v3345_v22 = vmul.f32 0.95, %v3326_v39  ;;  %v4851_v17 = vpop.f32.mrb[127].mxu1  ;;  %v3360_v29 = vadd.f32 %v3344_v56, %v6088_v16 }
 0x47d   : > { %v3361_v8 = vadd.f32 %v3345_v22, %v6091_v61 }
 0x47f   : > { %v6270_v25 = vpack.c.bf16 %v3361_v8, %v3360_v29 }
 0x52c   : > { %v3191_v55 = vpop.f32.mrb[72].mxu0 }
 0x52d   : > { %v3338_v59 = vmul.f32 0.95, %v3191_v55  ;;  %v4832_v15 = vpop.f32.mrb[73].mxu0 }
 0x52e   : > { %v3194_v42 = vpop.f32.mrb[74].mxu0 }
 0x52f   : > { %v3339_v34 = vmul.f32 0.95, %v3194_v42  ;;  %v4833_v18 = vpop.f32.mrb[75].mxu0  ;;  %v3630_v63 = vpop.f32.mrb[128].mxu1  ;;  %v3354_v2 = vadd.f32 %v3338_v59, %v6079_v62 }
 0x530   : > { %v3924_v49 = vmul.f32 0.95, %v3630_v63  ;;  %v4892_v9 = vpop.f32.mrb[129].mxu1 }
 0x531   : > { %v3355_v26 = vadd.f32 %v3339_v34, %v6083_v53  ;;  %v3633_v7 = vpop.f32.mrb[130].mxu1 }
 0x532   : > { %v3925_v35 = vmul.f32 0.95, %v3633_v7  ;;  %v4893_v24 = vpop.f32.mrb[131].mxu1  ;;  %v6284_v57 = vadd.f32 %v3924_v49, %v6032_v14 }
 0x533   : > { %v3366_v12 = vpack.c.bf16 %v3355_v26, %v3354_v2 }
 0x534   : > { %v6287_v44 = vadd.f32 %v3925_v35, %v6035_v3  ;;  %v3279_v50 = vpop.f32.mrb[76].mxu0 }
 0x535   : > { %v3342_v47 = vmul.f32 0.95, %v3279_v50  ;;  %v4844_v43 = vpop.f32.mrb[77].mxu0  ;;  %4862 = vmatprep.mubr.msk.bf16.mxu0 %vm375_vm0, %v3366_v12  ;;  %4913 = vmatpush3.bf16.msra.mxu1 %v3366_v12 }
 0x536   : > { %v3956_v20 = vpack.c.bf16 %v6287_v44, %v6284_v57  ;;  %v3282_v19 = vpop.f32.mrb[78].mxu0  ;;  %4863 = vmatmul.mubr.msk.bf16.gmra.mrb[64].mxu0 %vm375_vm0, %v3367_v52  ;;  %4918 = vmatprep.subr.bf16.mxu1 %v6427_v5 }
 0x537   : > { %v3343_v36 = vmul.f32 0.95, %v3282_v19  ;;  %v4845_v14 = vpop.f32.mrb[79].mxu0  ;;  %v3671_v56 = vpop.f32.mrb[132].mxu1  ;;  %v3358_v39 = vadd.f32 %v3342_v47, %v6098_v11 }
 0x538   : > { %v3926_v28 = vmul.f32 0.95, %v3671_v56  ;;  %v4898_v3 = vpop.f32.mrb[133].mxu1  ;;  %4915 = vmatmul.mubr.msk.bf16.vlgmr.msra.gmra.mrb[144].mxu1 %vm1359_vm2, %v5817_v31 }
 0x539   : > { %v3359_v22 = vadd.f32 %v3343_v36, %v6103_v51  ;;  %v3674_v17 = vpop.f32.mrb[134].mxu1  ;;  %4919 = vmatpush3.bf16.msra.mxu1 %v3367_v52  ;;  %4920 = vmatprep.mubr.msk.bf16.mxu1 %vm5272_vm1, %v6427_v5 }
 0x53a   : > { %v3927_v29 = vmul.f32 0.95, %v3674_v17  ;;  %v4899_v8 = vpop.f32.mrb[135].mxu1  ;;  %4924 = vmatprep.subr.bf16.mxu1 %v6427_v5  ;;  %v3942_v13 = vadd.f32 %v3926_v28, %v6023_v54 }
 0x53b   : > { %v3368_v45 = vpack.c.bf16 %v3359_v22, %v3358_v39 }
 0x53c   : > { %v3943_v55 = vadd.f32 %v3927_v29, %v6027_v33 }
 0x53d   : > { %4866 = vmatprep.mubr.msk.bf16.mxu0 %vm375_vm0, %v3368_v45 }
 0x53e   : > { %v3957_v31 = vpack.c.bf16 %v3943_v55, %v3942_v13  ;;  %4867 = vmatmul.mubr.msk.bf16.gmra.mrb[68].mxu0 %vm375_vm0, %v6270_v25 }
 0x53f   : > { %v3712_v59 = vpop.f32.mrb[136].mxu1  ;;  %4872 = vmatprep.mubr.msk.bf16.mxu0 %vm375_vm0, %v6430_v58  ;;  %v3991_v58 = vsel %vm375_vm0, %v4340_v38, 0 }
 0x540   : > { %v3928_v52 = vmul.f32 0.95, %v3712_v59  ;;  %v4904_v15 = vpop.f32.mrb[137].mxu1  ;;  %4921 = vmatmul.mubr.msk.bf16.vlgmr.msra.gmra.mrb[148].mxu1 %vm1359_vm2, %v5925_v41 }
 0x541   : > { %4925 = vmatpush3.bf16.msra.mxu1 %v3368_v45  ;;  %v3715_v42 = vpop.f32.mrb[138].mxu1  ;;  %4926 = vmatprep.mubr.msk.bf16.mxu1 %vm5272_vm1, %v6427_v5 }
 0x542   : > { %v3929_v54 = vmul.f32 0.95, %v3715_v42  ;;  %v4905_v33 = vpop.f32.mrb[139].mxu1  ;;  %4930 = vmatprep.subr.bf16.mxu1 %v6427_v5  ;;  %v3944_v34 = vadd.f32 %v3928_v52, %v6046_v48 }
 0x544   : > { %v3945_v18 = vadd.f32 %v3929_v54, %v6053_v32 }
 0x546   : > { %v3958_v63 = vpack.c.bf16 %v3945_v18, %v3944_v34  ;;  %4873 = vmatmul.mubr.msk.bf16.vlgmr.msra.gmra.mrb[56].mxu0 %vm375_vm0, %v6431_v30 }
 0x547   : > { %v3753_v41 = vpop.f32.mrb[140].mxu1  ;;  %4876 = vmatprep.mubr.msk.bf16.mxu0 %vm375_vm0, %v5384_v23  ;;  %4937 = vmatpush3.bf16.xpose.msra.mxu0 %v3991_v58 }
 0x548   : > { %v3930_v49 = vmul.f32 0.95, %v3753_v41  ;;  %v4910_v9 = vpop.f32.mrb[141].mxu1  ;;  %4927 = vmatmul.mubr.msk.bf16.vlgmr.msra.gmra.mrb[152].mxu1 %vm1359_vm2, %v5933_v40 }
 0x549   : > { %4931 = vmatpush3.bf16.msra.mxu1 %v6270_v25  ;;  %v3756_v48 = vpop.f32.mrb[142].mxu1  ;;  %4932 = vmatprep.mubr.msk.bf16.mxu1 %vm5272_vm1, %v6427_v5 }
 0x54a   : > { %v3931_v32 = vmul.f32 0.95, %v3756_v48  ;;  %v4911_v38 = vpop.f32.mrb[143].mxu1  ;;  %v3946_v30 = vadd.f32 %v3930_v49, %v6038_v37 }
 0x54c   : > { %v3947_v2 = vadd.f32 %v3931_v32, %v6043_v4 }
 0x54e   : > { %v3959_v26 = vpack.c.bf16 %v3947_v2, %v3946_v30  ;;  %4877 = vmatmul.mubr.msk.bf16.gmra.mrb[60].mxu0 %vm375_vm0, %v5398_v27 }
 0x54f   : > { %4880 = vmatprep.mubr.msk.bf16.mxu0 %vm375_vm0, %v5354_v6 }
 0x550   : > { %4933 = vmatmul.mubr.msk.bf16.vlgmr.msra.gmra.mrb[156].mxu1 %vm1359_vm2, %v5928_v0 }
 0x556   : > { %4881 = vmatmul.mubr.msk.bf16.gmra.mrb[64].mxu0 %vm375_vm0, %v5359_v10 }
 0x557   : > { %4884 = vmatprep.mubr.msk.bf16.mxu0 %vm375_vm0, %v6429_v46 }
 0x55e   : > { %4885 = vmatmul.mubr.msk.bf16.gmra.mrb[68].mxu0 %vm375_vm0, %v6428_v60 }
 0x55f   : > { %4938 = vmatprep.mubr.msk.bf16.mxu0 %vm375_vm0, %v3956_v20 }
 0x566   : > { %4939 = vmatmul.mubr.msk.bf16.vlgmr.msra.gmra.mrb[56].mxu0 %vm375_vm0, %v3957_v31 }
 0x567   : > { %4942 = vmatprep.mubr.msk.bf16.mxu0 %vm375_vm0, %v3958_v63 }
 0x56e   : > { %4943 = vmatmul.mubr.msk.bf16.gmra.mrb[60].mxu0 %vm375_vm0, %v3959_v26 }
 0x60b   : > { %v3794_v6 = vpop.f32.mrb[144].mxu1 }
 0x60c   : > { %v3932_v23 = vmul.f32 0.95, %v3794_v6  ;;  %v4916_v27 = vpop.f32.mrb[145].mxu1 }
 0x60d   : > { %v3797_v5 = vpop.f32.mrb[146].mxu1 }
 0x60e   : > { %v3933_v0 = vmul.f32 0.95, %v3797_v5  ;;  %v4917_v10 = vpop.f32.mrb[147].mxu1  ;;  %v3948_v40 = vadd.f32 %v3932_v23, %v6079_v62 }
 0x610   : > { %v3949_v46 = vadd.f32 %v3933_v0, %v6083_v53 }
 0x612   : > { %v3960_v37 = vpack.c.bf16 %v3949_v46, %v3948_v40 }
 0x613   : > { %v3835_v60 = vpop.f32.mrb[148].mxu1 }
 0x614   : > { %v3934_v4 = vmul.f32 0.95, %v3835_v60  ;;  %v4922_v25 = vpop.f32.mrb[149].mxu1  ;;  %4946 = vmatprep.mubr.msk.bf16.mxu0 %vm375_vm0, %v3960_v37 }
 0x615   : > { %v3838_v7 = vpop.f32.mrb[150].mxu1 }
 0x616   : > { %v3935_v35 = vmul.f32 0.95, %v3838_v7  ;;  %v4923_v24 = vpop.f32.mrb[151].mxu1  ;;  %v3950_v12 = vadd.f32 %v3934_v4, %v6065_v1 }
 0x618   : > { %v3951_v57 = vadd.f32 %v3935_v35, %v6068_v21 }
 0x61a   : > { %v3961_v44 = vpack.c.bf16 %v3951_v57, %v3950_v12 }
 0x61b   : > { %v3876_v50 = vpop.f32.mrb[152].mxu1 }
 0x61c   : > { %v3936_v47 = vmul.f32 0.95, %v3876_v50  ;;  %v4928_v43 = vpop.f32.mrb[153].mxu1  ;;  %4947 = vmatmul.mubr.msk.bf16.gmra.mrb[64].mxu0 %vm375_vm0, %v3961_v44 }
 0x61d   : > { %v3879_v62 = vpop.f32.mrb[154].mxu1 }
 0x61e   : > { %v3937_v53 = vmul.f32 0.95, %v3879_v62  ;;  %v4929_v20 = vpop.f32.mrb[155].mxu1  ;;  %v3952_v19 = vadd.f32 %v3936_v47, %v6098_v11  ;;  %v4306_v11 = vld [vmem:[%s6409_s6] ss:$0 sm:$0xff] }
 0x620   : > { %v3953_v36 = vadd.f32 %v3937_v53, %v6103_v51  ;;  %v4349_v51 = vld [vmem:[%s6411_s8] ss:$0 sm:$0xff] }
 0x621   : > { %v4958_v8 = vadd.f32 %v4349_v51, %v4306_v11 }
 0x622   : > { %v3962_v14 = vpack.c.bf16 %v3953_v36, %v3952_v19 }
 0x623   : > { %v3917_v56 = vpop.f32.mrb[156].mxu1 }
 0x624   : > { %v3938_v28 = vmul.f32 0.95, %v3917_v56  ;;  %v4934_v1 = vpop.f32.mrb[157].mxu1  ;;  %4950 = vmatprep.mubr.msk.bf16.mxu0 %vm375_vm0, %v3962_v14 }
 0x625   : > { %v3920_v21 = vpop.f32.mrb[158].mxu1 }
 0x626   : > { %v3939_v3 = vmul.f32 0.95, %v3920_v21  ;;  %v4935_v39 = vpop.f32.mrb[159].mxu1  ;;  %v3954_v22 = vadd.f32 %v3938_v28, %v6088_v16 }
 0x628   : > { %v3955_v17 = vadd.f32 %v3939_v3, %v6091_v61 }
 0x62a   : > { %v3963_v29 = vpack.c.bf16 %v3955_v17, %v3954_v22 }
 0x62c   : > { %4951 = vmatmul.mubr.msk.bf16.gmra.mrb[68].mxu0 %vm375_vm0, %v3963_v29 }
 0x639   : > { %v4940_v16 = vpop.f32.mrb[56].mxu0 }
 0x63a   : > { %v4957_v61 = vadd.f32 %v4958_v8, %v4940_v16  ;;  %v4027_v45 = vpop.f32.mrb[57].mxu0 }
 0x63b   : > { %v4959_v13 = vadd.f32 %v4958_v8, %v4027_v45  ;;  %v4941_v55 = vpop.f32.mrb[58].mxu0 }
 0x63c   : > { %4147 = vst.msk [vmem:[%s6366_s24 + $0x10] sm:$0xff] %vm4144_vm3, %v4957_v61  ;;  %v4961_v31 = vadd.f32 %v4958_v8, %v4941_v55  ;;  %v4030_v59 = vpop.f32.mrb[59].mxu0 }
 0x63d   : > { %4145 = vst.msk [vmem:[%s6366_s24] sm:$0xff] %vm4144_vm3, %v4959_v13  ;;  %v4963_v52 = vadd.f32 %v4958_v8, %v4030_v59 }
 0x63e   : > { %4148 = vst.msk [vmem:[%s6366_s24 + $0x18] sm:$0xff] %vm4144_vm3, %v4961_v31 }
 0x63f   : > { %4146 = vst.msk [vmem:[%s6366_s24 + $0x8] sm:$0xff] %vm4144_vm3, %v4963_v52 }
 0x641   : > { %v4944_v15 = vpop.f32.mrb[60].mxu0 }
 0x642   : > { %v4965_v42 = vadd.f32 %v4958_v8, %v4944_v15  ;;  %v4043_v54 = vpop.f32.mrb[61].mxu0 }
 0x643   : > { %v4967_v33 = vadd.f32 %v4958_v8, %v4043_v54  ;;  %v4945_v34 = vpop.f32.mrb[62].mxu0 }
 0x644   : > { %4151 = vst.msk [vmem:[%s6366_s24 + $0x30] sm:$0xff] %vm4144_vm3, %v4965_v42  ;;  %v4969_v18 = vadd.f32 %v4958_v8, %v4945_v34  ;;  %v4046_v58 = vpop.f32.mrb[63].mxu0 }
 0x645   : > { %4149 = vst.msk [vmem:[%s6366_s24 + $0x20] sm:$0xff] %vm4144_vm3, %v4967_v33  ;;  %v4971_v63 = vadd.f32 %v4958_v8, %v4046_v58 }
 0x646   : > { %4152 = vst.msk [vmem:[%s6366_s24 + $0x38] sm:$0xff] %vm4144_vm3, %v4969_v18 }
 0x647   : > { %4150 = vst.msk [vmem:[%s6366_s24 + $0x28] sm:$0xff] %vm4144_vm3, %v4971_v63 }
 0x6ef   : > { %v4948_v41 = vpop.f32.mrb[64].mxu0 }
 0x6f0   : > { %v4973_v49 = vadd.f32 %v4958_v8, %v4948_v41  ;;  %v4059_v9 = vpop.f32.mrb[65].mxu0 }
 0x6f1   : > { %v4975_v48 = vadd.f32 %v4958_v8, %v4059_v9  ;;  %v4949_v32 = vpop.f32.mrb[66].mxu0 }
 0x6f2   : > { %4155 = vst.msk [vmem:[%s6366_s24 + $0x50] sm:$0xff] %vm4144_vm3, %v4973_v49  ;;  %v4977_v38 = vadd.f32 %v4958_v8, %v4949_v32  ;;  %v4062_v30 = vpop.f32.mrb[67].mxu0 }
 0x6f3   : > { %4153 = vst.msk [vmem:[%s6366_s24 + $0x40] sm:$0xff] %vm4144_vm3, %v4975_v48  ;;  %v4979_v2 = vadd.f32 %v4958_v8, %v4062_v30 }
 0x6f4   : > { %4156 = vst.msk [vmem:[%s6366_s24 + $0x58] sm:$0xff] %vm4144_vm3, %v4977_v38 }
 0x6f5   : > { %4154 = vst.msk [vmem:[%s6366_s24 + $0x48] sm:$0xff] %vm4144_vm3, %v4979_v2 }
 0x6ff   : > { %v4952_v26 = vpop.f32.mrb[68].mxu0 }
 0x700   : > { %v4981_v6 = vadd.f32 %v4958_v8, %v4952_v26  ;;  %v4075_v23 = vpop.f32.mrb[69].mxu0 }
 0x701   : > { %v4983_v27 = vadd.f32 %v4958_v8, %v4075_v23  ;;  %v4953_v5 = vpop.f32.mrb[70].mxu0 }
 0x702   : > { %4159 = vst.msk [vmem:[%s6366_s24 + $0x70] sm:$0xff] %vm4144_vm3, %v4981_v6  ;;  %v4985_v0 = vadd.f32 %v4958_v8, %v4953_v5  ;;  %v4078_v10 = vpop.f32.mrb[71].mxu0 }
 0x703   : > { %4157 = vst.msk [vmem:[%s6366_s24 + $0x60] sm:$0xff] %vm4144_vm3, %v4983_v27  ;;  %v4987_v40 = vadd.f32 %v4958_v8, %v4078_v10 }
 0x704   : > { %4160 = vst.msk [vmem:[%s6366_s24 + $0x78] sm:$0xff] %vm4144_vm3, %v4985_v0 }
 0x705   : > { %4158 = vst.msk [vmem:[%s6366_s24 + $0x68] sm:$0xff] %vm4144_vm3, %v4987_v40 }
 0x706 PF: > { %s19_s30 = sadd.s32 1, %s5269_s30  }
 0x707   : > { %p16_p4 = scmp.ge.s32.totalorder %s19_s30, 4  }
 0x709   :  { %18 = sbr.rel (!%p16_p4) target bundleno = 1 (0x1), region = 90 }

</bundles_post_ra>
